<compile_context>
chip_gen: v7x
topology: tpu7x:2x2x1
jax: 0.10.0
libtpu: 0.0.40
codegen_flags: <defaults>
</compile_context>

<pallas_src>
import math
import jax
import jax.numpy as jnp
from jax import lax
from jax.experimental import pallas as pl
from jax.experimental.pallas import tpu as pltpu  # noqa: F401  (kept for completeness)

# ---- small config consistent with TransformerBlock / ModelArgs semantics ----
B, S = 2, 8
DIM = 32
N_HEADS = 4
HEAD_DIM = DIM // N_HEADS        # 8  (Attention uses dim // n_heads)
HIDDEN = 64
N_EXPERTS = 4
TOPK = 2                         # num_experts_per_tok
EPS = 1e-5
ROPE_THETA = 500000.0
N_TOK = B * S


# ----------------------------- fused kernel -----------------------------------
def fused_block_kernel(x_ref, anorm_ref, wattn_ref, wo_ref, cos_ref, sin_ref,
                       bias_ref, fnorm_ref, wg_ref, w13_ref, w2_ref, out_ref):
    # ---------------- attention: h = x + wo(SDPA(rope(q), rope(k), v)) ----------
    x = x_ref[...]                                          # (N_TOK, DIM)
    xn = x * lax.rsqrt(jnp.mean(x * x, axis=-1, keepdims=True) + EPS)
    xn = xn * anorm_ref[...]

    # merged projection [q | k | v | q@R | k@R]; RoPE rotation matrix folded into
    # the weights wrapper-side, so no extra MXU pushes / (D,D) operand here.
    proj = jnp.dot(xn, wattn_ref[...], preferred_element_type=jnp.float32)
    q = proj[:, 0 * DIM:1 * DIM]
    k = proj[:, 1 * DIM:2 * DIM]
    v = proj[:, 2 * DIM:3 * DIM]
    qR = proj[:, 3 * DIM:4 * DIM]
    kR = proj[:, 4 * DIM:5 * DIM]

    cos = cos_ref[...]
    sin = sin_ref[...]
    # interleaved-pair rotary:  out[2i] = x[2i]*cos - x[2i+1]*sin
    #                           out[2i+1] = x[2i+1]*cos + x[2i]*sin
    qr = q * cos + qR * sin
    kr = k * cos + kR * sin

    bias = bias_ref[...]                # (N_TOK, N_TOK): 0 allowed / -1e30 masked
    scale = 1.0 / math.sqrt(HEAD_DIM)

    acc = jnp.zeros((N_TOK, DIM), jnp.float32)
    for h in range(N_HEADS):            # unrolled at trace time
        lo = h * HEAD_DIM
        hi = lo + HEAD_DIM
        qh = qr[:, lo:hi]
        kh = kr[:, lo:hi]
        vh = v[:, lo:hi]
        s = jnp.dot(qh, kh.T, preferred_element_type=jnp.float32) * scale + bias
        m = jnp.max(s, axis=-1, keepdims=True)
        p = jnp.exp(s - m)
        p = p / jnp.sum(p, axis=-1, keepdims=True)
        oh = jnp.dot(p, vh, preferred_element_type=jnp.float32)
        # fold the per-head row-slice of wo into the loop (proven, zero-relayout path)
        acc = acc + jnp.dot(oh, wo_ref[lo:hi, :], preferred_element_type=jnp.float32)
    h_res = x + acc

    # ---------------- MoE FFN: out = h + sum_e w_e * SwiGLU_e(ffn_norm(h)) ------
    hn = h_res * lax.rsqrt(jnp.mean(h_res * h_res, axis=-1, keepdims=True) + EPS)
    hn = hn * fnorm_ref[...]

    logits = jnp.dot(hn, wg_ref[...], preferred_element_type=jnp.float32)
    lmax = jnp.max(logits, axis=-1, keepdims=True)
    pexp = jnp.exp(logits - lmax)
    scores = pexp / jnp.sum(pexp, axis=-1, keepdims=True)   # (N_TOK, N_EXPERTS)

    # top-2 routing, lowest-index tie-breaking (matches lax.top_k), renormalized.
    lane = lax.broadcasted_iota(jnp.int32, scores.shape, 1)
    m1 = jnp.max(scores, axis=-1, keepdims=True)
    i1 = jnp.min(jnp.where(scores == m1, lane, N_EXPERTS), axis=-1, keepdims=True)
    sel1 = lane == i1
    s2 = jnp.where(sel1, -jnp.inf, scores)
    m2 = jnp.max(s2, axis=-1, keepdims=True)
    i2 = jnp.min(jnp.where(s2 == m2, lane, N_EXPERTS), axis=-1, keepdims=True)
    sel2 = lane == i2
    wts = (jnp.where(sel1, m1, 0.0) + jnp.where(sel2, m2, 0.0)) / (m1 + m2)

    # all experts' w1/w3 stage as ONE lane-dense matmul: (N_TOK, NE*2*HIDDEN)
    a13 = jnp.dot(hn, w13_ref[...], preferred_element_type=jnp.float32)

    moe = jnp.zeros((N_TOK, DIM), jnp.float32)
    for e in range(N_EXPERTS):          # unrolled; dense equivalent of token dispatch
        base = e * 2 * HIDDEN
        a = a13[:, base:base + HIDDEN]
        g = a13[:, base + HIDDEN:base + 2 * HIDDEN]
        mid = (a * jax.nn.sigmoid(a)) * g
        ye = jnp.dot(mid, w2_ref[e * HIDDEN:(e + 1) * HIDDEN, :],
                     preferred_element_type=jnp.float32)
        moe = moe + wts[:, e:e + 1] * ye

    out_ref[...] = h_res + moe


# ----------------------------- wrapper ----------------------------------------
def transformer_block(x, params):
    (anorm, wq, wk, wv, wo, fnorm, wg, w1, w3, w2, cos_f, sin_f, R) = params
    Bsz, Sl, D = x.shape
    n_tok = Bsz * Sl

    # fold the RoPE pair-rotation into the projection weights and merge q/k/v/qR/kR
    w_attn = jnp.concatenate([wq, wk, wv, wq @ R, wk @ R], axis=1)    # (D, 5D)
    cos_t = jnp.tile(cos_f, (Bsz, 1))                                  # (n_tok, D)
    sin_t = jnp.tile(sin_f, (Bsz, 1))

    # block-diagonal causal additive bias over flattened (batch*seq) tokens
    t = jnp.arange(n_tok)
    same_b = (t[:, None] // Sl) == (t[None, :] // Sl)
    causal = (t[:, None] % Sl) >= (t[None, :] % Sl)
    bias = jnp.where(same_b & causal, 0.0, -1e30).astype(jnp.float32)

    # merge all experts' w1/w3 into one (D, NE*2*HIDDEN) operand; flatten w2 rows
    w13 = jnp.concatenate([w1, w3], axis=-1)                           # (NE, D, 2H)
    w13 = jnp.transpose(w13, (1, 0, 2)).reshape(D, N_EXPERTS * 2 * HIDDEN)
    w2f = w2.reshape(N_EXPERTS * HIDDEN, D)

    out_flat = pl.pallas_call(
        fused_block_kernel,
        out_shape=jax.ShapeDtypeStruct((n_tok, D), jnp.float32),
    )(x.reshape(n_tok, D), anorm, w_attn, wo, cos_t, sin_t, bias,
      fnorm, wg, w13, w2f)

    return out_flat.reshape(Bsz, Sl, D)


# ----------------------------- params / tables --------------------------------
def rope_tables(seqlen, head_dim, n_heads, theta, start_pos=0):
    freqs = 1.0 / (theta ** (jnp.arange(0, head_dim, 2, dtype=jnp.float32)
                             / head_dim))
    t = jnp.arange(start_pos, start_pos + seqlen, dtype=jnp.float32)
    ang = jnp.outer(t, freqs)                       # (S, hd/2)
    cos = jnp.repeat(jnp.cos(ang), 2, axis=-1)      # pairs (2i, 2i+1) share angle
    sin = jnp.repeat(jnp.sin(ang), 2, axis=-1)
    cos_f = jnp.tile(cos, (1, n_heads))             # (S, DIM), same per head
    sin_f = jnp.tile(sin, (1, n_heads))
    # pair-rotation matrix: (x @ R)[2i] = -x[2i+1], (x @ R)[2i+1] = x[2i]
    D = head_dim * n_heads
    R = jnp.zeros((D, D), jnp.float32)
    idx = jnp.arange(0, D, 2)
    R = R.at[idx + 1, idx].set(-1.0)
    R = R.at[idx, idx + 1].set(1.0)
    return cos_f, sin_f, R


def init_params(key):
    ks = jax.random.split(key, 8)

    def u(k, shape, fan_in):
        b = 1.0 / math.sqrt(fan_in)
        return jax.random.uniform(k, shape, jnp.float32, -b, b)

    anorm = jnp.ones((1, DIM), jnp.float32)
    fnorm = jnp.ones((1, DIM), jnp.float32)
    wq = u(ks[0], (DIM, DIM), DIM)
    wk = u(ks[1], (DIM, DIM), DIM)
    wv = u(ks[2], (DIM, DIM), DIM)
    wo = u(ks[3], (DIM, DIM), DIM)
    wg = u(ks[4], (DIM, N_EXPERTS), DIM)
    w1 = u(ks[5], (N_EXPERTS, DIM, HIDDEN), DIM)
    w3 = u(ks[6], (N_EXPERTS, DIM, HIDDEN), DIM)
    w2 = u(ks[7], (N_EXPERTS, HIDDEN, DIM), HIDDEN)
    cos_f, sin_f, R = rope_tables(S, HEAD_DIM, N_HEADS, ROPE_THETA, start_pos=0)
    return (anorm, wq, wk, wv, wo, fnorm, wg, w1, w3, w2, cos_f, sin_f, R)


# ----------------------------- pure-JAX reference ------------------------------
def reference_block(x, params):
    (anorm, wq, wk, wv, wo, fnorm, wg, w1, w3, w2, cos_f, sin_f, R) = params

    def rms(v, w):
        return v * lax.rsqrt(jnp.mean(v * v, -1, keepdims=True) + EPS) * w

    xn = rms(x, anorm)
    q = xn @ wq
    k = xn @ wk
    v = xn @ wv
    qr = q * cos_f + (q @ R) * sin_f
    kr = k * cos_f + (k @ R) * sin_f
    q4 = qr.reshape(B, S, N_HEADS, HEAD_DIM).transpose(0, 2, 1, 3)
    k4 = kr.reshape(B, S, N_HEADS, HEAD_DIM).transpose(0, 2, 1, 3)
    v4 = v.reshape(B, S, N_HEADS, HEAD_DIM).transpose(0, 2, 1, 3)
    s = jnp.einsum('bhqd,bhkd->bhqk', q4, k4) / math.sqrt(HEAD_DIM)
    causal = jnp.arange(S)[:, None] >= jnp.arange(S)[None, :]
    s = jnp.where(causal, s, -jnp.inf)
    p = jax.nn.softmax(s, axis=-1)
    o = jnp.einsum('bhqk,bhkd->bhqd', p, v4).transpose(0, 2, 1, 3).reshape(B, S, DIM)
    h = x + o @ wo

    hn = rms(h, fnorm)
    flat = hn.reshape(-1, DIM)
    scores = jax.nn.softmax(flat @ wg, axis=-1)
    vals, idx = lax.top_k(scores, TOPK)
    wts = vals / jnp.sum(vals, axis=-1, keepdims=True)
    y = jnp.zeros_like(flat)
    for e in range(N_EXPERTS):
        a = flat @ w1[e]
        ye = (a * jax.nn.sigmoid(a) * (flat @ w3[e])) @ w2[e]
        we = jnp.sum(jnp.where(idx == e, wts, 0.0), axis=-1, keepdims=True)
        y = y + we * ye
    return h + y.reshape(B, S, DIM)


# ----------------------------- main --------------------------------------------
if __name__ == "__main__":
    key = jax.random.PRNGKey(0)
    pkey, xkey = jax.random.split(key)
    params = init_params(pkey)
    x = jax.random.normal(xkey, (B, S, DIM), jnp.float32)

    out = transformer_block(x, params)
    out = jax.block_until_ready(out)

    ref = reference_block(x, params)
    assert out.shape == (B, S, DIM)
    assert bool(jnp.all(jnp.isfinite(out)))
    assert bool(jnp.allclose(out, ref, atol=2e-3, rtol=2e-3))
    print("KERNEL_OK")
</pallas_src>

<mosaic_0001>
module attributes {stable_mosaic.version = 11 : i64} {
  func.func @fused_block_kernel(%arg0: memref<16x32xf32, #tpu.memory_space<vmem>>, %arg1: memref<1x32xf32, #tpu.memory_space<vmem>>, %arg2: memref<32x160xf32, #tpu.memory_space<vmem>>, %arg3: memref<32x32xf32, #tpu.memory_space<vmem>>, %arg4: memref<16x32xf32, #tpu.memory_space<vmem>>, %arg5: memref<16x32xf32, #tpu.memory_space<vmem>>, %arg6: memref<16x16xf32, #tpu.memory_space<vmem>>, %arg7: memref<1x32xf32, #tpu.memory_space<vmem>>, %arg8: memref<32x4xf32, #tpu.memory_space<vmem>>, %arg9: memref<32x512xf32, #tpu.memory_space<vmem>>, %arg10: memref<256x32xf32, #tpu.memory_space<vmem>>, %arg11: memref<16x32xf32, #tpu.memory_space<vmem>>) attributes {dimension_semantics = [], scalar_prefetch = 0 : i64, scratch_operands = 0 : i64, tpu.core_type = #tpu.core_type<tc>} {
    %c0 = arith.constant 0 : index
    %c0_0 = arith.constant 0 : index
    %0 = vector.load %arg0[%c0, %c0_0] : memref<16x32xf32, #tpu.memory_space<vmem>>, vector<16x32xf32>
    %1 = arith.mulf %0, %0 : vector<16x32xf32>
    %cst = arith.constant dense<0.000000e+00> : vector<16xf32>
    %2 = vector.multi_reduction <add>, %1, %cst [1] : vector<16x32xf32> to vector<16xf32>
    %3 = vector.shape_cast %2 : vector<16xf32> to vector<16x1xf32>
    %cst_1 = arith.constant 3.200000e+01 : f32
    %4 = vector.broadcast %cst_1 : f32 to vector<16x1xf32>
    %5 = arith.divf %3, %4 : vector<16x1xf32>
    %cst_2 = arith.constant 9.99999974E-6 : f32
    %6 = vector.broadcast %cst_2 : f32 to vector<16x1xf32>
    %7 = arith.addf %5, %6 : vector<16x1xf32>
    %8 = math.rsqrt %7 : vector<16x1xf32>
    %9 = vector.broadcast %8 : vector<16x1xf32> to vector<16x32xf32>
    %10 = arith.mulf %0, %9 : vector<16x32xf32>
    %c0_3 = arith.constant 0 : index
    %c0_4 = arith.constant 0 : index
    %11 = vector.load %arg1[%c0_3, %c0_4] : memref<1x32xf32, #tpu.memory_space<vmem>>, vector<1x32xf32>
    %12 = vector.broadcast %11 : vector<1x32xf32> to vector<16x32xf32>
    %13 = arith.mulf %10, %12 : vector<16x32xf32>
    %c0_5 = arith.constant 0 : index
    %c0_6 = arith.constant 0 : index
    %14 = vector.load %arg2[%c0_5, %c0_6] : memref<32x160xf32, #tpu.memory_space<vmem>>, vector<32x160xf32>
    %cst_7 = arith.constant dense<0.000000e+00> : vector<16x160xf32>
    %15 = tpu.matmul %13, %14, %cst_7 {dimension_numbers = #tpu.dot_dimension_numbers<[1], [0], [0], [1], [0, 0, 1, 1], [], []>} : vector<16x32xf32>, vector<32x160xf32>, vector<16x160xf32> -> vector<16x160xf32>
    %16 = vector.extract_strided_slice %15 {offsets = [0, 0], sizes = [16, 32], strides = [1, 1]} : vector<16x160xf32> to vector<16x32xf32>
    %17 = vector.extract_strided_slice %15 {offsets = [0, 32], sizes = [16, 32], strides = [1, 1]} : vector<16x160xf32> to vector<16x32xf32>
    %18 = vector.extract_strided_slice %15 {offsets = [0, 64], sizes = [16, 32], strides = [1, 1]} : vector<16x160xf32> to vector<16x32xf32>
    %19 = vector.extract_strided_slice %15 {offsets = [0, 96], sizes = [16, 32], strides = [1, 1]} : vector<16x160xf32> to vector<16x32xf32>
    %20 = vector.extract_strided_slice %15 {offsets = [0, 128], sizes = [16, 32], strides = [1, 1]} : vector<16x160xf32> to vector<16x32xf32>
    %c0_8 = arith.constant 0 : index
    %c0_9 = arith.constant 0 : index
    %21 = vector.load %arg4[%c0_8, %c0_9] : memref<16x32xf32, #tpu.memory_space<vmem>>, vector<16x32xf32>
    %c0_10 = arith.constant 0 : index
    %c0_11 = arith.constant 0 : index
    %22 = vector.load %arg5[%c0_10, %c0_11] : memref<16x32xf32, #tpu.memory_space<vmem>>, vector<16x32xf32>
    %23 = arith.mulf %16, %21 : vector<16x32xf32>
    %24 = arith.mulf %19, %22 : vector<16x32xf32>
    %25 = arith.addf %23, %24 : vector<16x32xf32>
    %26 = arith.mulf %17, %21 : vector<16x32xf32>
    %27 = arith.mulf %20, %22 : vector<16x32xf32>
    %28 = arith.addf %26, %27 : vector<16x32xf32>
    %c0_12 = arith.constant 0 : index
    %c0_13 = arith.constant 0 : index
    %29 = vector.load %arg6[%c0_12, %c0_13] : memref<16x16xf32, #tpu.memory_space<vmem>>, vector<16x16xf32>
    %cst_14 = arith.constant 0.000000e+00 : f32
    %30 = vector.broadcast %cst_14 : f32 to vector<16x32xf32>
    %31 = vector.extract_strided_slice %25 {offsets = [0, 0], sizes = [16, 8], strides = [1, 1]} : vector<16x32xf32> to vector<16x8xf32>
    %32 = vector.extract_strided_slice %28 {offsets = [0, 0], sizes = [16, 8], strides = [1, 1]} : vector<16x32xf32> to vector<16x8xf32>
    %33 = vector.extract_strided_slice %18 {offsets = [0, 0], sizes = [16, 8], strides = [1, 1]} : vector<16x32xf32> to vector<16x8xf32>
    %34 = tpu.transpose %32, [1, 0] : vector<16x8xf32> -> vector<8x16xf32>
    %cst_15 = arith.constant dense<0.000000e+00> : vector<16x16xf32>
    %35 = tpu.matmul %31, %34, %cst_15 {dimension_numbers = #tpu.dot_dimension_numbers<[1], [0], [0], [1], [0, 0, 1, 1], [], []>} : vector<16x8xf32>, vector<8x16xf32>, vector<16x16xf32> -> vector<16x16xf32>
    %cst_16 = arith.constant 0.353553385 : f32
    %36 = vector.broadcast %cst_16 : f32 to vector<16x16xf32>
    %37 = arith.mulf %35, %36 : vector<16x16xf32>
    %38 = arith.addf %37, %29 : vector<16x16xf32>
    %cst_17 = arith.constant dense<0xFF800000> : vector<16xf32>
    %39 = vector.multi_reduction <maximumf>, %38, %cst_17 [1] : vector<16x16xf32> to vector<16xf32>
    %40 = vector.shape_cast %39 : vector<16xf32> to vector<16x1xf32>
    %41 = vector.broadcast %40 : vector<16x1xf32> to vector<16x16xf32>
    %42 = arith.subf %38, %41 : vector<16x16xf32>
    %43 = math.exp %42 : vector<16x16xf32>
    %cst_18 = arith.constant dense<0.000000e+00> : vector<16xf32>
    %44 = vector.multi_reduction <add>, %43, %cst_18 [1] : vector<16x16xf32> to vector<16xf32>
    %45 = vector.shape_cast %44 : vector<16xf32> to vector<16x1xf32>
    %46 = vector.broadcast %45 : vector<16x1xf32> to vector<16x16xf32>
    %47 = arith.divf %43, %46 : vector<16x16xf32>
    %cst_19 = arith.constant dense<0.000000e+00> : vector<16x8xf32>
    %48 = tpu.matmul %47, %33, %cst_19 {dimension_numbers = #tpu.dot_dimension_numbers<[1], [0], [0], [1], [0, 0, 1, 1], [], []>} : vector<16x16xf32>, vector<16x8xf32>, vector<16x8xf32> -> vector<16x8xf32>
    %c0_20 = arith.constant 0 : index
    %c0_21 = arith.constant 0 : index
    %49 = vector.load %arg3[%c0_20, %c0_21] : memref<32x32xf32, #tpu.memory_space<vmem>>, vector<8x32xf32>
    %cst_22 = arith.constant dense<0.000000e+00> : vector<16x32xf32>
    %50 = tpu.matmul %48, %49, %cst_22 {dimension_numbers = #tpu.dot_dimension_numbers<[1], [0], [0], [1], [0, 0, 1, 1], [], []>} : vector<16x8xf32>, vector<8x32xf32>, vector<16x32xf32> -> vector<16x32xf32>
    %51 = arith.addf %30, %50 : vector<16x32xf32>
    %52 = vector.extract_strided_slice %25 {offsets = [0, 8], sizes = [16, 8], strides = [1, 1]} : vector<16x32xf32> to vector<16x8xf32>
    %53 = vector.extract_strided_slice %28 {offsets = [0, 8], sizes = [16, 8], strides = [1, 1]} : vector<16x32xf32> to vector<16x8xf32>
    %54 = vector.extract_strided_slice %18 {offsets = [0, 8], sizes = [16, 8], strides = [1, 1]} : vector<16x32xf32> to vector<16x8xf32>
    %55 = tpu.transpose %53, [1, 0] : vector<16x8xf32> -> vector<8x16xf32>
    %cst_23 = arith.constant dense<0.000000e+00> : vector<16x16xf32>
    %56 = tpu.matmul %52, %55, %cst_23 {dimension_numbers = #tpu.dot_dimension_numbers<[1], [0], [0], [1], [0, 0, 1, 1], [], []>} : vector<16x8xf32>, vector<8x16xf32>, vector<16x16xf32> -> vector<16x16xf32>
    %cst_24 = arith.constant 0.353553385 : f32
    %57 = vector.broadcast %cst_24 : f32 to vector<16x16xf32>
    %58 = arith.mulf %56, %57 : vector<16x16xf32>
    %59 = arith.addf %58, %29 : vector<16x16xf32>
    %cst_25 = arith.constant dense<0xFF800000> : vector<16xf32>
    %60 = vector.multi_reduction <maximumf>, %59, %cst_25 [1] : vector<16x16xf32> to vector<16xf32>
    %61 = vector.shape_cast %60 : vector<16xf32> to vector<16x1xf32>
    %62 = vector.broadcast %61 : vector<16x1xf32> to vector<16x16xf32>
    %63 = arith.subf %59, %62 : vector<16x16xf32>
    %64 = math.exp %63 : vector<16x16xf32>
    %cst_26 = arith.constant dense<0.000000e+00> : vector<16xf32>
    %65 = vector.multi_reduction <add>, %64, %cst_26 [1] : vector<16x16xf32> to vector<16xf32>
    %66 = vector.shape_cast %65 : vector<16xf32> to vector<16x1xf32>
    %67 = vector.broadcast %66 : vector<16x1xf32> to vector<16x16xf32>
    %68 = arith.divf %64, %67 : vector<16x16xf32>
    %cst_27 = arith.constant dense<0.000000e+00> : vector<16x8xf32>
    %69 = tpu.matmul %68, %54, %cst_27 {dimension_numbers = #tpu.dot_dimension_numbers<[1], [0], [0], [1], [0, 0, 1, 1], [], []>} : vector<16x16xf32>, vector<16x8xf32>, vector<16x8xf32> -> vector<16x8xf32>
    %c8 = arith.constant 8 : index
    %c0_28 = arith.constant 0 : index
    %70 = vector.load %arg3[%c8, %c0_28] : memref<32x32xf32, #tpu.memory_space<vmem>>, vector<8x32xf32>
    %cst_29 = arith.constant dense<0.000000e+00> : vector<16x32xf32>
    %71 = tpu.matmul %69, %70, %cst_29 {dimension_numbers = #tpu.dot_dimension_numbers<[1], [0], [0], [1], [0, 0, 1, 1], [], []>} : vector<16x8xf32>, vector<8x32xf32>, vector<16x32xf32> -> vector<16x32xf32>
    %72 = arith.addf %51, %71 : vector<16x32xf32>
    %73 = vector.extract_strided_slice %25 {offsets = [0, 16], sizes = [16, 8], strides = [1, 1]} : vector<16x32xf32> to vector<16x8xf32>
    %74 = vector.extract_strided_slice %28 {offsets = [0, 16], sizes = [16, 8], strides = [1, 1]} : vector<16x32xf32> to vector<16x8xf32>
    %75 = vector.extract_strided_slice %18 {offsets = [0, 16], sizes = [16, 8], strides = [1, 1]} : vector<16x32xf32> to vector<16x8xf32>
    %76 = tpu.transpose %74, [1, 0] : vector<16x8xf32> -> vector<8x16xf32>
    %cst_30 = arith.constant dense<0.000000e+00> : vector<16x16xf32>
    %77 = tpu.matmul %73, %76, %cst_30 {dimension_numbers = #tpu.dot_dimension_numbers<[1], [0], [0], [1], [0, 0, 1, 1], [], []>} : vector<16x8xf32>, vector<8x16xf32>, vector<16x16xf32> -> vector<16x16xf32>
    %cst_31 = arith.constant 0.353553385 : f32
    %78 = vector.broadcast %cst_31 : f32 to vector<16x16xf32>
    %79 = arith.mulf %77, %78 : vector<16x16xf32>
    %80 = arith.addf %79, %29 : vector<16x16xf32>
    %cst_32 = arith.constant dense<0xFF800000> : vector<16xf32>
    %81 = vector.multi_reduction <maximumf>, %80, %cst_32 [1] : vector<16x16xf32> to vector<16xf32>
    %82 = vector.shape_cast %81 : vector<16xf32> to vector<16x1xf32>
    %83 = vector.broadcast %82 : vector<16x1xf32> to vector<16x16xf32>
    %84 = arith.subf %80, %83 : vector<16x16xf32>
    %85 = math.exp %84 : vector<16x16xf32>
    %cst_33 = arith.constant dense<0.000000e+00> : vector<16xf32>
    %86 = vector.multi_reduction <add>, %85, %cst_33 [1] : vector<16x16xf32> to vector<16xf32>
    %87 = vector.shape_cast %86 : vector<16xf32> to vector<16x1xf32>
    %88 = vector.broadcast %87 : vector<16x1xf32> to vector<16x16xf32>
    %89 = arith.divf %85, %88 : vector<16x16xf32>
    %cst_34 = arith.constant dense<0.000000e+00> : vector<16x8xf32>
    %90 = tpu.matmul %89, %75, %cst_34 {dimension_numbers = #tpu.dot_dimension_numbers<[1], [0], [0], [1], [0, 0, 1, 1], [], []>} : vector<16x16xf32>, vector<16x8xf32>, vector<16x8xf32> -> vector<16x8xf32>
    %c16 = arith.constant 16 : index
    %c0_35 = arith.constant 0 : index
    %91 = vector.load %arg3[%c16, %c0_35] : memref<32x32xf32, #tpu.memory_space<vmem>>, vector<8x32xf32>
    %cst_36 = arith.constant dense<0.000000e+00> : vector<16x32xf32>
    %92 = tpu.matmul %90, %91, %cst_36 {dimension_numbers = #tpu.dot_dimension_numbers<[1], [0], [0], [1], [0, 0, 1, 1], [], []>} : vector<16x8xf32>, vector<8x32xf32>, vector<16x32xf32> -> vector<16x32xf32>
    %93 = arith.addf %72, %92 : vector<16x32xf32>
    %94 = vector.extract_strided_slice %25 {offsets = [0, 24], sizes = [16, 8], strides = [1, 1]} : vector<16x32xf32> to vector<16x8xf32>
    %95 = vector.extract_strided_slice %28 {offsets = [0, 24], sizes = [16, 8], strides = [1, 1]} : vector<16x32xf32> to vector<16x8xf32>
    %96 = vector.extract_strided_slice %18 {offsets = [0, 24], sizes = [16, 8], strides = [1, 1]} : vector<16x32xf32> to vector<16x8xf32>
    %97 = tpu.transpose %95, [1, 0] : vector<16x8xf32> -> vector<8x16xf32>
    %cst_37 = arith.constant dense<0.000000e+00> : vector<16x16xf32>
    %98 = tpu.matmul %94, %97, %cst_37 {dimension_numbers = #tpu.dot_dimension_numbers<[1], [0], [0], [1], [0, 0, 1, 1], [], []>} : vector<16x8xf32>, vector<8x16xf32>, vector<16x16xf32> -> vector<16x16xf32>
    %cst_38 = arith.constant 0.353553385 : f32
    %99 = vector.broadcast %cst_38 : f32 to vector<16x16xf32>
    %100 = arith.mulf %98, %99 : vector<16x16xf32>
    %101 = arith.addf %100, %29 : vector<16x16xf32>
    %cst_39 = arith.constant dense<0xFF800000> : vector<16xf32>
    %102 = vector.multi_reduction <maximumf>, %101, %cst_39 [1] : vector<16x16xf32> to vector<16xf32>
    %103 = vector.shape_cast %102 : vector<16xf32> to vector<16x1xf32>
    %104 = vector.broadcast %103 : vector<16x1xf32> to vector<16x16xf32>
    %105 = arith.subf %101, %104 : vector<16x16xf32>
    %106 = math.exp %105 : vector<16x16xf32>
    %cst_40 = arith.constant dense<0.000000e+00> : vector<16xf32>
    %107 = vector.multi_reduction <add>, %106, %cst_40 [1] : vector<16x16xf32> to vector<16xf32>
    %108 = vector.shape_cast %107 : vector<16xf32> to vector<16x1xf32>
    %109 = vector.broadcast %108 : vector<16x1xf32> to vector<16x16xf32>
    %110 = arith.divf %106, %109 : vector<16x16xf32>
    %cst_41 = arith.constant dense<0.000000e+00> : vector<16x8xf32>
    %111 = tpu.matmul %110, %96, %cst_41 {dimension_numbers = #tpu.dot_dimension_numbers<[1], [0], [0], [1], [0, 0, 1, 1], [], []>} : vector<16x16xf32>, vector<16x8xf32>, vector<16x8xf32> -> vector<16x8xf32>
    %c24 = arith.constant 24 : index
    %c0_42 = arith.constant 0 : index
    %112 = vector.load %arg3[%c24, %c0_42] : memref<32x32xf32, #tpu.memory_space<vmem>>, vector<8x32xf32>
    %cst_43 = arith.constant dense<0.000000e+00> : vector<16x32xf32>
    %113 = tpu.matmul %111, %112, %cst_43 {dimension_numbers = #tpu.dot_dimension_numbers<[1], [0], [0], [1], [0, 0, 1, 1], [], []>} : vector<16x8xf32>, vector<8x32xf32>, vector<16x32xf32> -> vector<16x32xf32>
    %114 = arith.addf %93, %113 : vector<16x32xf32>
    %115 = arith.addf %0, %114 : vector<16x32xf32>
    %116 = arith.mulf %115, %115 : vector<16x32xf32>
    %cst_44 = arith.constant dense<0.000000e+00> : vector<16xf32>
    %117 = vector.multi_reduction <add>, %116, %cst_44 [1] : vector<16x32xf32> to vector<16xf32>
    %118 = vector.shape_cast %117 : vector<16xf32> to vector<16x1xf32>
    %cst_45 = arith.constant 3.200000e+01 : f32
    %119 = vector.broadcast %cst_45 : f32 to vector<16x1xf32>
    %120 = arith.divf %118, %119 : vector<16x1xf32>
    %cst_46 = arith.constant 9.99999974E-6 : f32
    %121 = vector.broadcast %cst_46 : f32 to vector<16x1xf32>
    %122 = arith.addf %120, %121 : vector<16x1xf32>
    %123 = math.rsqrt %122 : vector<16x1xf32>
    %124 = vector.broadcast %123 : vector<16x1xf32> to vector<16x32xf32>
    %125 = arith.mulf %115, %124 : vector<16x32xf32>
    %c0_47 = arith.constant 0 : index
    %c0_48 = arith.constant 0 : index
    %126 = vector.load %arg7[%c0_47, %c0_48] : memref<1x32xf32, #tpu.memory_space<vmem>>, vector<1x32xf32>
    %127 = vector.broadcast %126 : vector<1x32xf32> to vector<16x32xf32>
    %128 = arith.mulf %125, %127 : vector<16x32xf32>
    %c0_49 = arith.constant 0 : index
    %c0_50 = arith.constant 0 : index
    %129 = vector.load %arg8[%c0_49, %c0_50] : memref<32x4xf32, #tpu.memory_space<vmem>>, vector<32x4xf32>
    %cst_51 = arith.constant dense<0.000000e+00> : vector<16x4xf32>
    %130 = tpu.matmul %128, %129, %cst_51 {dimension_numbers = #tpu.dot_dimension_numbers<[1], [0], [0], [1], [0, 0, 1, 1], [], []>} : vector<16x32xf32>, vector<32x4xf32>, vector<16x4xf32> -> vector<16x4xf32>
    %cst_52 = arith.constant dense<0xFF800000> : vector<16xf32>
    %131 = vector.multi_reduction <maximumf>, %130, %cst_52 [1] : vector<16x4xf32> to vector<16xf32>
    %132 = vector.shape_cast %131 : vector<16xf32> to vector<16x1xf32>
    %133 = vector.broadcast %132 : vector<16x1xf32> to vector<16x4xf32>
    %134 = arith.subf %130, %133 : vector<16x4xf32>
    %135 = math.exp %134 : vector<16x4xf32>
    %cst_53 = arith.constant dense<0.000000e+00> : vector<16xf32>
    %136 = vector.multi_reduction <add>, %135, %cst_53 [1] : vector<16x4xf32> to vector<16xf32>
    %137 = vector.shape_cast %136 : vector<16xf32> to vector<16x1xf32>
    %138 = vector.broadcast %137 : vector<16x1xf32> to vector<16x4xf32>
    %139 = arith.divf %135, %138 : vector<16x4xf32>
    %140 = tpu.iota {dimensions = array<i32: 1>} : vector<16x4xi32>
    %cst_54 = arith.constant dense<0xFF800000> : vector<16xf32>
    %141 = vector.multi_reduction <maximumf>, %139, %cst_54 [1] : vector<16x4xf32> to vector<16xf32>
    %142 = vector.shape_cast %141 : vector<16xf32> to vector<16x1xf32>
    %143 = vector.broadcast %142 : vector<16x1xf32> to vector<16x4xf32>
    %144 = arith.cmpf oeq, %139, %143 : vector<16x4xf32>
    %c4_i32 = arith.constant 4 : i32
    %145 = vector.broadcast %c4_i32 : i32 to vector<16x4xi32>
    %146 = arith.select %144, %140, %145 : vector<16x4xi1>, vector<16x4xi32>
    %cst_55 = arith.constant dense<2147483647> : vector<16xi32>
    %147 = vector.multi_reduction <minsi>, %146, %cst_55 [1] : vector<16x4xi32> to vector<16xi32>
    %148 = vector.shape_cast %147 : vector<16xi32> to vector<16x1xi32>
    %149 = vector.broadcast %148 : vector<16x1xi32> to vector<16x4xi32>
    %150 = arith.cmpi eq, %140, %149 : vector<16x4xi32>
    %cst_56 = arith.constant 0xFF800000 : f32
    %151 = vector.broadcast %cst_56 : f32 to vector<16x4xf32>
    %152 = arith.select %150, %151, %139 : vector<16x4xi1>, vector<16x4xf32>
    %cst_57 = arith.constant dense<0xFF800000> : vector<16xf32>
    %153 = vector.multi_reduction <maximumf>, %152, %cst_57 [1] : vector<16x4xf32> to vector<16xf32>
    %154 = vector.shape_cast %153 : vector<16xf32> to vector<16x1xf32>
    %155 = vector.broadcast %154 : vector<16x1xf32> to vector<16x4xf32>
    %156 = arith.cmpf oeq, %152, %155 : vector<16x4xf32>
    %c4_i32_58 = arith.constant 4 : i32
    %157 = vector.broadcast %c4_i32_58 : i32 to vector<16x4xi32>
    %158 = arith.select %156, %140, %157 : vector<16x4xi1>, vector<16x4xi32>
    %cst_59 = arith.constant dense<2147483647> : vector<16xi32>
    %159 = vector.multi_reduction <minsi>, %158, %cst_59 [1] : vector<16x4xi32> to vector<16xi32>
    %160 = vector.shape_cast %159 : vector<16xi32> to vector<16x1xi32>
    %161 = vector.broadcast %160 : vector<16x1xi32> to vector<16x4xi32>
    %162 = arith.cmpi eq, %140, %161 : vector<16x4xi32>
    %cst_60 = arith.constant 0.000000e+00 : f32
    %163 = vector.shape_cast %142 : vector<16x1xf32> to vector<16x1xf32>
    %164 = vector.broadcast %163 : vector<16x1xf32> to vector<16x4xf32>
    %165 = vector.broadcast %cst_60 : f32 to vector<16x4xf32>
    %166 = arith.select %150, %164, %165 : vector<16x4xi1>, vector<16x4xf32>
    %cst_61 = arith.constant 0.000000e+00 : f32
    %167 = vector.shape_cast %154 : vector<16x1xf32> to vector<16x1xf32>
    %168 = vector.broadcast %167 : vector<16x1xf32> to vector<16x4xf32>
    %169 = vector.broadcast %cst_61 : f32 to vector<16x4xf32>
    %170 = arith.select %162, %168, %169 : vector<16x4xi1>, vector<16x4xf32>
    %171 = arith.addf %166, %170 : vector<16x4xf32>
    %172 = arith.addf %142, %154 : vector<16x1xf32>
    %173 = vector.broadcast %172 : vector<16x1xf32> to vector<16x4xf32>
    %174 = arith.divf %171, %173 : vector<16x4xf32>
    %c0_62 = arith.constant 0 : index
    %c0_63 = arith.constant 0 : index
    %175 = vector.load %arg9[%c0_62, %c0_63] : memref<32x512xf32, #tpu.memory_space<vmem>>, vector<32x512xf32>
    %cst_64 = arith.constant dense<0.000000e+00> : vector<16x512xf32>
    %176 = tpu.matmul %128, %175, %cst_64 {dimension_numbers = #tpu.dot_dimension_numbers<[1], [0], [0], [1], [0, 0, 1, 1], [], []>} : vector<16x32xf32>, vector<32x512xf32>, vector<16x512xf32> -> vector<16x512xf32>
    %cst_65 = arith.constant 0.000000e+00 : f32
    %177 = vector.broadcast %cst_65 : f32 to vector<16x32xf32>
    %178 = vector.extract_strided_slice %176 {offsets = [0, 0], sizes = [16, 64], strides = [1, 1]} : vector<16x512xf32> to vector<16x64xf32>
    %179 = vector.extract_strided_slice %176 {offsets = [0, 64], sizes = [16, 64], strides = [1, 1]} : vector<16x512xf32> to vector<16x64xf32>
    %180 = arith.negf %178 : vector<16x64xf32>
    %181 = math.exp %180 : vector<16x64xf32>
    %cst_66 = arith.constant 1.000000e+00 : f32
    %182 = vector.broadcast %cst_66 : f32 to vector<16x64xf32>
    %183 = arith.addf %182, %181 : vector<16x64xf32>
    %184 = arith.divf %182, %183 : vector<16x64xf32>
    %185 = arith.mulf %178, %184 : vector<16x64xf32>
    %186 = arith.mulf %185, %179 : vector<16x64xf32>
    %c0_67 = arith.constant 0 : index
    %c0_68 = arith.constant 0 : index
    %187 = vector.load %arg10[%c0_67, %c0_68] : memref<256x32xf32, #tpu.memory_space<vmem>>, vector<64x32xf32>
    %cst_69 = arith.constant dense<0.000000e+00> : vector<16x32xf32>
    %188 = tpu.matmul %186, %187, %cst_69 {dimension_numbers = #tpu.dot_dimension_numbers<[1], [0], [0], [1], [0, 0, 1, 1], [], []>} : vector<16x64xf32>, vector<64x32xf32>, vector<16x32xf32> -> vector<16x32xf32>
    %189 = vector.extract_strided_slice %174 {offsets = [0, 0], sizes = [16, 1], strides = [1, 1]} : vector<16x4xf32> to vector<16x1xf32>
    %190 = vector.broadcast %189 : vector<16x1xf32> to vector<16x32xf32>
    %191 = arith.mulf %190, %188 : vector<16x32xf32>
    %192 = arith.addf %177, %191 : vector<16x32xf32>
    %193 = vector.extract_strided_slice %176 {offsets = [0, 128], sizes = [16, 64], strides = [1, 1]} : vector<16x512xf32> to vector<16x64xf32>
    %194 = vector.extract_strided_slice %176 {offsets = [0, 192], sizes = [16, 64], strides = [1, 1]} : vector<16x512xf32> to vector<16x64xf32>
    %195 = arith.negf %193 : vector<16x64xf32>
    %196 = math.exp %195 : vector<16x64xf32>
    %cst_70 = arith.constant 1.000000e+00 : f32
    %197 = vector.broadcast %cst_70 : f32 to vector<16x64xf32>
    %198 = arith.addf %197, %196 : vector<16x64xf32>
    %199 = arith.divf %197, %198 : vector<16x64xf32>
    %200 = arith.mulf %193, %199 : vector<16x64xf32>
    %201 = arith.mulf %200, %194 : vector<16x64xf32>
    %c64 = arith.constant 64 : index
    %c0_71 = arith.constant 0 : index
    %202 = vector.load %arg10[%c64, %c0_71] : memref<256x32xf32, #tpu.memory_space<vmem>>, vector<64x32xf32>
    %cst_72 = arith.constant dense<0.000000e+00> : vector<16x32xf32>
    %203 = tpu.matmul %201, %202, %cst_72 {dimension_numbers = #tpu.dot_dimension_numbers<[1], [0], [0], [1], [0, 0, 1, 1], [], []>} : vector<16x64xf32>, vector<64x32xf32>, vector<16x32xf32> -> vector<16x32xf32>
    %204 = vector.extract_strided_slice %174 {offsets = [0, 1], sizes = [16, 1], strides = [1, 1]} : vector<16x4xf32> to vector<16x1xf32>
    %205 = vector.broadcast %204 : vector<16x1xf32> to vector<16x32xf32>
    %206 = arith.mulf %205, %203 : vector<16x32xf32>
    %207 = arith.addf %192, %206 : vector<16x32xf32>
    %208 = vector.extract_strided_slice %176 {offsets = [0, 256], sizes = [16, 64], strides = [1, 1]} : vector<16x512xf32> to vector<16x64xf32>
    %209 = vector.extract_strided_slice %176 {offsets = [0, 320], sizes = [16, 64], strides = [1, 1]} : vector<16x512xf32> to vector<16x64xf32>
    %210 = arith.negf %208 : vector<16x64xf32>
    %211 = math.exp %210 : vector<16x64xf32>
    %cst_73 = arith.constant 1.000000e+00 : f32
    %212 = vector.broadcast %cst_73 : f32 to vector<16x64xf32>
    %213 = arith.addf %212, %211 : vector<16x64xf32>
    %214 = arith.divf %212, %213 : vector<16x64xf32>
    %215 = arith.mulf %208, %214 : vector<16x64xf32>
    %216 = arith.mulf %215, %209 : vector<16x64xf32>
    %c128 = arith.constant 128 : index
    %c0_74 = arith.constant 0 : index
    %217 = vector.load %arg10[%c128, %c0_74] : memref<256x32xf32, #tpu.memory_space<vmem>>, vector<64x32xf32>
    %cst_75 = arith.constant dense<0.000000e+00> : vector<16x32xf32>
    %218 = tpu.matmul %216, %217, %cst_75 {dimension_numbers = #tpu.dot_dimension_numbers<[1], [0], [0], [1], [0, 0, 1, 1], [], []>} : vector<16x64xf32>, vector<64x32xf32>, vector<16x32xf32> -> vector<16x32xf32>
    %219 = vector.extract_strided_slice %174 {offsets = [0, 2], sizes = [16, 1], strides = [1, 1]} : vector<16x4xf32> to vector<16x1xf32>
    %220 = vector.broadcast %219 : vector<16x1xf32> to vector<16x32xf32>
    %221 = arith.mulf %220, %218 : vector<16x32xf32>
    %222 = arith.addf %207, %221 : vector<16x32xf32>
    %223 = vector.extract_strided_slice %176 {offsets = [0, 384], sizes = [16, 64], strides = [1, 1]} : vector<16x512xf32> to vector<16x64xf32>
    %224 = vector.extract_strided_slice %176 {offsets = [0, 448], sizes = [16, 64], strides = [1, 1]} : vector<16x512xf32> to vector<16x64xf32>
    %225 = arith.negf %223 : vector<16x64xf32>
    %226 = math.exp %225 : vector<16x64xf32>
    %cst_76 = arith.constant 1.000000e+00 : f32
    %227 = vector.broadcast %cst_76 : f32 to vector<16x64xf32>
    %228 = arith.addf %227, %226 : vector<16x64xf32>
    %229 = arith.divf %227, %228 : vector<16x64xf32>
    %230 = arith.mulf %223, %229 : vector<16x64xf32>
    %231 = arith.mulf %230, %224 : vector<16x64xf32>
    %c192 = arith.constant 192 : index
    %c0_77 = arith.constant 0 : index
    %232 = vector.load %arg10[%c192, %c0_77] : memref<256x32xf32, #tpu.memory_space<vmem>>, vector<64x32xf32>
    %cst_78 = arith.constant dense<0.000000e+00> : vector<16x32xf32>
    %233 = tpu.matmul %231, %232, %cst_78 {dimension_numbers = #tpu.dot_dimension_numbers<[1], [0], [0], [1], [0, 0, 1, 1], [], []>} : vector<16x64xf32>, vector<64x32xf32>, vector<16x32xf32> -> vector<16x32xf32>
    %234 = vector.extract_strided_slice %174 {offsets = [0, 3], sizes = [16, 1], strides = [1, 1]} : vector<16x4xf32> to vector<16x1xf32>
    %235 = vector.broadcast %234 : vector<16x1xf32> to vector<16x32xf32>
    %236 = arith.mulf %235, %233 : vector<16x32xf32>
    %237 = arith.addf %222, %236 : vector<16x32xf32>
    %238 = arith.addf %115, %237 : vector<16x32xf32>
    %c0_79 = arith.constant 0 : index
    %c0_80 = arith.constant 0 : index
    %239 = vector.load %arg11[%c0_79, %c0_80] : memref<16x32xf32, #tpu.memory_space<vmem>>, vector<16x32xf32>
    tpu.vector_store %arg11[%c0_79, %c0_80], %238 {strides = array<i32>} : memref<16x32xf32, #tpu.memory_space<vmem>>, vector<16x32xf32>,
    return
  }
}

</mosaic_0001>

<bundles_post_ra>
// kernel: tpu_custom_call.1
= control target key start
LH: loop header
LB: loop body
LE: loop exit
PB: predicated region body
PF: predicated region fallthrough
CT: control target
= control target key end

     0   :  { %vm43_vm0 = vcmask 261120   ;;  %s3550_s0 = inlined_call_operand.vmem [shape: f32[16,32], index: 0, kind: input, shape index: {}]   ;;  %s3551_s1 = inlined_call_operand.vmem [shape: f32[1,32], index: 1, kind: input, shape index: {}]   ;;  %s3552_s2 = inlined_call_operand.vmem [shape: f32[32,160], index: 2, kind: input, shape index: {}]   ;;  %s3553_s3 = inlined_call_operand.vmem [shape: f32[32,32], index: 3, kind: input, shape index: {}]   ;;  %s3554_s4 = inlined_call_operand.vmem [shape: f32[16,32], index: 4, kind: input, shape index: {}]   ;;  %s3555_s5 = inlined_call_operand.vmem [shape: f32[16,32], index: 5, kind: input, shape index: {}]   ;;  %s3556_s6 = inlined_call_operand.vmem [shape: f32[16,16], index: 6, kind: input, shape index: {}]   ;;  %s3557_s7 = inlined_call_operand.vmem [shape: f32[1,32], index: 7, kind: input, shape index: {}]   ;;  %s3558_s8 = inlined_call_operand.vmem [shape: f32[32,4], index: 8, kind: input, shape index: {}]   ;;  %s3559_s9 = inlined_call_operand.vmem [shape: f32[32,512], index: 9, kind: input, shape index: {}]   ;;  %s3560_s10 = inlined_call_operand.vmem [shape: f32[256,32], index: 10, kind: input, shape index: {}]   ;;  %s3561_s11 = inlined_call_operand.hbm [shape: f32[16,32], index: 11, kind: output, shape index: {}]  }
   0x1   :  { %v3001_v0 = vld [vmem:[%s3550_s0] sm:$0xff]  ;;  %v3006_v1 = vld [vmem:[%s3550_s0 + $0x8] sm:$0xff] }
   0x2   :  { %16 = vsyncpa [#allocation3], 0  ;;  %v41_v2 = vmul.f32 %v3001_v0, %v3001_v0  ;;  %v42_v3 = vmul.f32 %v3006_v1, %v3006_v1  ;;  %v69_v6 = vld [vmem:[%s3552_s2 + $0x8] sm:$0xff]  ;;  %v71_v7 = vld [vmem:[%s3552_s2 + $0x18] sm:$0xff]  ;;  %v2918_v13 = vmov 0.0   ;;  %s2919_s21 = smov 96  }
   0x3   :  { %v68_v8 = vld [vmem:[%s3552_s2] sm:$0xff]  ;;  %v2600_v9 = vpack.c.bf16 %v71_v7, %v69_v6  ;;  %v70_v10 = vld [vmem:[%s3552_s2 + $0x10] sm:$0xff]  ;;  %v73_v11 = vld [vmem:[%s3552_s2 + $0x28] sm:$0xff]  ;;  %146 = vmatprep.mubr.f32.mxu0 %v2918_v13  ;;  %s2920_s22 = smov 32   ;;  %vm215_vm1 = vcmask 64512   ;;  %vm305_vm3 = vcmask 130048  }
   0x4   :  { %v44_v4 = vsel %vm43_vm0, %v41_v2, 0.0  ;;  %v47_v5 = vsel %vm43_vm0, %v42_v3, 0.0  ;;  %v75_v12 = vld [vmem:[%s3552_s2 + $0x38] sm:$0xff]  ;;  %v2602_v14 = vpack.c.bf16 %v70_v10, %v68_v8  ;;  %v72_v16 = vld [vmem:[%s3552_s2 + $0x20] sm:$0xff]  ;;  %v74_v17 = vld [vmem:[%s3552_s2 + $0x30] sm:$0xff]  ;;  %s2924_s30 = smov 80  }
   0x5   :  { %45 = vadd.xlane.f32.xlu0 %v44_v4  ;;  %v2604_v15 = vpack.c.bf16 %v75_v12, %v73_v11  ;;  %2601 = vmatprep.subr.bf16.mxu0 %v2600_v9  ;;  %v2606_v18 = vpack.c.bf16 %v74_v17, %v72_v16  ;;  %v161_v19 = vld [vmem:[%s3555_s5] sm:$0xff]  ;;  %v162_v21 = vld [vmem:[%s3555_s5 + $0x8] sm:$0xff]  ;;  %vm3084_vm2 = vmpackc.low %vm215_vm1, %vm215_vm1  ;;  %s2925_s12 = smov 64   ;;  %s2926_s13 = smov 112   ;;  %vm1473_vm4 = vcmask 31744   ;;  %vm1798_vm9 = vcmask 523264  }
   0x6   :  { %2603 = vmatpush1.bf16.msra.mxu0 %v2602_v14  ;;  %v159_v20 = vld [vmem:[%s3554_s4] sm:$0xff]  ;;  %167 = vrot.lane.b32.xlu1 %v161_v19, %s2919_s21  ;;  %v160_v22 = vld [vmem:[%s3554_s4 + $0x8] sm:$0xff]  ;;  %s2922_s4 = smov 120   ;;  %s2927_s14 = smov 104  }
   0x7   :  { %2605 = vmatprep.subr.bf16.mxu0 %v2604_v15  ;;  %v2289_v30 = vld [vmem:[%s3551_s1] ss:$0 sm:$0xff]  ;;  %s2921_s1 = smov 88   ;;  %v3103_v12 = vld [vmem:[%s3556_s6 + $0x8] sm:$0xff]  ;;  %s2928_s15 = smov 72  }
   0x8   :  { %v3108_v17 = vld [vmem:[%s3556_s6] sm:$0xff]  ;;  %s2923_s6 = smov 56   ;;  %s2929_s20 = smov 48  }
   0x9   :  { %48 = vadd.xlane.f32.xlu0 %v47_v5 }
   0xa   :  { %2607 = vmatpush1.bf16.msra.mxu0 %v2606_v18  ;;  %169 = vrot.lane.b32.xlu1 %v162_v21, %s2919_s21 }
   0xe   :  { %189 = vrot.lane.b32.xlu1 %v160_v22, %s2920_s22 }
  0x1f   :  { %187 = vrot.lane.b32.xlu0 %v159_v20, %s2920_s22 }
  0x78   :  { %v168_v43 = vpop.permute.xlu1 %167 }
  0x7c   :  { %v170_v45 = vpop.permute.xlu1 %169 }
  0x80   :  { %v190_v47 = vpop.permute.xlu1 %189 }
  0x92   :  { %v46_v23 = vpop.xlane.xlu0 %45 }
  0x93   :  { %v51_v24 = vmul.f32 0.03125, %v46_v23 }
  0x95   :  { %v53_v25 = vadd.f32 1e-05, %v51_v24 }
  0x96   :  { %v49_v26 = vpop.xlane.xlu0 %48 }
  0x97   :  { %2810 = vrsqrt.f32 %v53_v25  ;;  %v52_v27 = vmul.f32 0.03125, %v49_v26 }
  0x99   :  { %v54_v28 = vadd.f32 1e-05, %v52_v27 }
  0x9a   :  { %v188_v48 = vpop.permute.xlu0 %187 }
  0x9b   :  { %2812 = vrsqrt.f32 %v54_v28 }
  0xa1   :  { %v2811_v29 = vpop.eup %2810 }
  0xa2   :  { %v57_v31 = vmul.f32 %v2811_v29, %v3001_v0 }
  0xa4   :  { %v66_v32 = vmul.f32 %v2289_v30, %v57_v31 }
  0xa5   :  { %v2813_v33 = vpop.eup %2812 }
  0xa6   :  { %2290 = vmatmul.mubr.msk.f32.vlgmr.msra.gmra.mrb[0].mxu0 %vm43_vm0, %v66_v32  ;;  %v58_v34 = vmul.f32 %v2813_v33, %v3006_v1 }
  0xa7   :  { %152 = vmatprep.mubr.f32.mxu0 %v2918_v13 }
  0xa8   :  { %v67_v35 = vmul.f32 %v2289_v30, %v58_v34 }
  0xaa   :  { %2291 = vmatmul.mubr.msk.f32.gmra.mrb[2].mxu0 %vm43_vm0, %v67_v35 }
 0x179   :  { %v148_v36 = vpop.f32.mrb[0].mxu0 }
 0x17a   :  { %v150_v37 = vpop.f32.mrb[1].mxu0  ;;  %v173_v44 = vmul.f32 %v168_v43, %v148_v36  ;;  %v193_v50 = vmul.f32 %v188_v48, %v148_v36  ;;  %v163_v55 = vmul.f32 %v159_v20, %v148_v36 }
 0x17b   :  { %v195_v38 = vmul.f32 %v161_v19, %v150_v37 }
 0x17d   :  { %199 = vrot.lane.b32.xlu1 %v195_v38, %s2920_s22  ;;  %v154_v39 = vpop.f32.mrb[2].mxu0 }
 0x17e   :  { %v156_v40 = vpop.f32.mrb[3].mxu0  ;;  %v3064_v41 = vpack.i.bf16 %v154_v39, %v148_v36  ;;  %v174_v46 = vmul.f32 %v170_v45, %v154_v39  ;;  %v194_v51 = vmul.f32 %v190_v47, %v154_v39  ;;  %v164_v59 = vmul.f32 %v160_v22, %v154_v39 }
 0x17f   :  { %v196_v42 = vmul.f32 %v162_v21, %v156_v40 }
 0x181   :  { %201 = vrot.lane.b32.xlu1 %v196_v42, %s2920_s22 }
 0x185   :  { %177 = vrot.lane.b32.xlu1 %v173_v44, %s2920_s22 }
 0x189   :  { %179 = vrot.lane.b32.xlu1 %v174_v46, %s2920_s22 }
 0x1ef   :  { %v200_v49 = vpop.permute.xlu1 %199 }
 0x1f0   :  { %v205_v53 = vadd.f32 %v200_v49, %v193_v50 }
 0x1f3   :  { %v202_v52 = vpop.permute.xlu1 %201 }
 0x1f4   :  { %v206_v54 = vadd.f32 %v202_v52, %v194_v51 }
 0x1f6   :  { %v3069_v56 = vpack.i.bf16 %v206_v54, %v205_v53 }
 0x1f7   :  { %v178_v57 = vpop.permute.xlu1 %177 }
 0x1f8   :  { %v3071_v58 = vadd.f32 %v178_v57, %v163_v55  ;;  %2768 = vrot.lane.b32.xlu0 %v3069_v56, %s2921_s1  ;;  %2763 = vrot.lane.b32.xlu1 %v3069_v56, %s2919_s21  ;;  %s2930_s21 = smov 40  }
 0x1fa   :  { %2441 = vmatprep.mubr.msk.f32.mxu1 %vm215_vm1, %v3071_v58 }
 0x1fb   :  { %v180_v60 = vpop.permute.xlu1 %179 }
 0x1fc   :  { %v3078_v61 = vadd.f32 %v180_v60, %v164_v59  ;;  %418 = vrot.lane.b32.xlu1 %v3071_v58, %s2922_s4 }
 0x1fe   :  { %420 = vrot.lane.b32.xlu0 %v3078_v61, %s2922_s4 }
 0x26a   :  { %v2769_v62 = vpop.permute.xlu0 %2768  ;;  %v2764_v63 = vpop.permute.xlu1 %2763 }
 0x26b   :  { %v2771_v2 = vunpack.i.h.bf16 %v2769_v62  ;;  %v2770_v3 = vunpack.i.l.bf16 %v2769_v62  ;;  %v2766_v4 = vunpack.i.h.bf16 %v2764_v63  ;;  %v2765_v5 = vunpack.i.l.bf16 %v2764_v63 }
 0x26d   :  { %v2618_v7 = vpack.c.bf16 %v2771_v2, %v2770_v3  ;;  %v2608_v8 = vpack.c.bf16 %v2766_v4, %v2765_v5 }
 0x26e   :  { %v419_v9 = vpop.permute.xlu1 %418 }
 0x26f   :  { %2610 = vmatprep.subr.msk.bf16.mxu1 %vm3084_vm2, %v2608_v8  ;;  %2620 = vmatprep.subr.msk.bf16.mxu0 %vm3084_vm2, %v2618_v7 }
 0x270   :  { %2455 = vmatprep.mubr.msk.f32.mxu0 %vm215_vm1, %v419_v9  ;;  %2613 = vmatpush3.bf16.xpose.msk.msra.mxu1 %vm3084_vm2, %v2608_v8  ;;  %v421_v10 = vpop.permute.xlu0 %420 }
 0x271   :  { %2623 = vmatpush3.bf16.xpose.msk.msra.mxu0 %vm3084_vm2, %v2618_v7 }
 0x277   :  { %2442 = vmatmul.mubr.msk.f32.vlgmr.msra.gmra.mrb[0].mxu1 %vm215_vm1, %v3078_v61 }
 0x278   :  { %2456 = vmatmul.mubr.msk.f32.vlgmr.msra.gmra.mrb[4].mxu0 %vm215_vm1, %v421_v10 }
 0x34a   :  { %v2443_v11 = vpop.f32.mrb[0].mxu1 }
 0x34b   :  { %v302_v14 = vmul.f32 0.35355338, %v2443_v11  ;;  %v2457_v15 = vpop.f32.mrb[4].mxu0  ;;  %v292_v16 = vpop.f32.mrb[1].mxu1 }
 0x34c   :  { %v510_v18 = vmul.f32 0.35355338, %v2457_v15  ;;  %v301_v19 = vmul.f32 0.35355338, %v292_v16  ;;  %v500_v20 = vpop.f32.mrb[5].mxu0 }
 0x34d   :  { %v509_v21 = vmul.f32 0.35355338, %v500_v20  ;;  %v304_v22 = vadd.f32 %v302_v14, %v3103_v12 }
 0x34e   :  { %v303_v23 = vadd.f32 %v301_v19, %v3108_v17  ;;  %v512_v27 = vadd.f32 %v510_v18, %v3103_v12 }
 0x34f   :  { %v309_v24 = vsel %vm305_vm3, %v304_v22, -inf  ;;  %v511_v25 = vadd.f32 %v509_v21, %v3108_v17 }
 0x350   :  { %310 = vmax.xlane.f32.xlu0 %v309_v24  ;;  %v306_v26 = vsel %vm305_vm3, %v303_v23, -inf  ;;  %v516_v29 = vsel %vm305_vm3, %v512_v27, -inf }
 0x351   :  { %307 = vmax.xlane.f32.xlu1 %v306_v26  ;;  %v513_v28 = vsel %vm305_vm3, %v511_v25, -inf  ;;  %v417_v26 = vld [vmem:[%s3553_s3] sm:$0xff] }
 0x354   :  { %514 = vmax.xlane.f32.xlu0 %v513_v28 }
 0x355   :  { %517 = vmax.xlane.f32.xlu1 %v516_v29 }
 0x3dd   :  { %v311_v30 = vpop.xlane.xlu0 %310 }
 0x3de   :  { %v313_v31 = vsub.f32 %v304_v22, %v311_v30  ;;  %v308_v32 = vpop.xlane.xlu1 %307 }
 0x3df   :  { %v312_v33 = vsub.f32 %v303_v23, %v308_v32 }
 0x3e0   :  { %v316_v34 = vmul.f32 1.442695, %v313_v31 }
 0x3e1   :  { %v314_v35 = vmul.f32 1.442695, %v312_v33  ;;  %v515_v36 = vpop.xlane.xlu0 %514 }
 0x3e2   :  { %2814 = vpow2.f32 %v316_v34  ;;  %v519_v37 = vsub.f32 %v511_v25, %v515_v36  ;;  %v518_v38 = vpop.xlane.xlu1 %517  ;;  %v622_v25 = vld [vmem:[%s3553_s3 + $0x8] sm:$0xff] }
 0x3e3   :  { %2816 = vpow2.f32 %v314_v35  ;;  %v520_v39 = vsub.f32 %v512_v27, %v518_v38  ;;  %2465 = vmatprep.subr.mxu0 %v622_v25 }
 0x3e4   :  { %v521_v40 = vmul.f32 1.442695, %v519_v37  ;;  %2466 = vmatpush3.msra.mxu0 %v622_v25 }
 0x3e5   :  { %v523_v42 = vmul.f32 1.442695, %v520_v39  ;;  %2470 = vmatprep.subr.mxu0 %v417_v26 }
 0x3e6   :  { %2818 = vpow2.f32 %v521_v40 }
 0x3e7   :  { %2820 = vpow2.f32 %v523_v42 }
 0x3ec   :  { %v2815_v43 = vpop.eup %2814 }
 0x3ed   :  { %v2817_v44 = vpop.eup %2816  ;;  %v321_v45 = vsel %vm305_vm3, %v2815_v43, 0.0 }
 0x3ee   :  { %322 = vadd.xlane.f32.xlu1 %v321_v45  ;;  %v318_v46 = vsel %vm305_vm3, %v2817_v44, 0.0 }
 0x3ef   :  { %319 = vadd.xlane.f32.xlu0 %v318_v46 }
 0x3f0   :  { %v2819_v47 = vpop.eup %2818 }
 0x3f1   :  { %v2821_v48 = vpop.eup %2820  ;;  %v525_v49 = vsel %vm305_vm3, %v2819_v47, 0.0 }
 0x3f2   :  { %v528_v50 = vsel %vm305_vm3, %v2821_v48, 0.0 }
 0x3f3   :  { %526 = vadd.xlane.f32.xlu0 %v525_v49  ;;  %529 = vadd.xlane.f32.xlu1 %v528_v50 }
 0x404   :  { %2778 = vrot.lane.b32.xlu1 %v3064_v41, %s2923_s6 }
 0x408   :  { %2783 = vrot.lane.b32.xlu1 %v3069_v56, %s2924_s30 }
 0x409   :  { %2773 = vrot.lane.b32.xlu0 %v3064_v41, %s2925_s12 }
 0x40c   :  { %787 = vrot.lane.b32.xlu1 %v3078_v61, %s2926_s13 }
 0x40d   :  { %785 = vrot.lane.b32.xlu0 %v3071_v58, %s2926_s13 }
 0x410   :  { %1073 = vrot.lane.b32.xlu1 %v3071_v58, %s2927_s14 }
 0x411   :  { %2788 = vrot.lane.b32.xlu0 %v3069_v56, %s2928_s15 }
 0x415   :  { %1075 = vrot.lane.b32.xlu0 %v3078_v61, %s2927_s14 }
 0x47b   :  { %v323_v51 = vpop.xlane.xlu1 %322 }
 0x47c   :  { %v320_v52 = vpop.xlane.xlu0 %319 }
 0x47d   :  { %2822 = vrcp.f32 %v320_v52 }
 0x47e   :  { %2824 = vrcp.f32 %v323_v51 }
 0x480   :  { %v527_v53 = vpop.xlane.xlu0 %526  ;;  %v530_v54 = vpop.xlane.xlu1 %529 }
 0x481   :  { %2826 = vrcp.f32 %v527_v53 }
 0x482   :  { %2828 = vrcp.f32 %v530_v54 }
 0x484   :  { %v2774_v55 = vpop.permute.xlu0 %2773  ;;  %v2779_v57 = vpop.permute.xlu1 %2778 }
 0x485   :  { %v2776_v59 = vunpack.i.h.bf16 %v2774_v55  ;;  %v2775_v60 = vunpack.i.l.bf16 %v2774_v55  ;;  %v2781_v62 = vunpack.i.h.bf16 %v2779_v57  ;;  %v2780_v63 = vunpack.i.l.bf16 %v2779_v57 }
 0x487   :  { %v2823_v58 = vpop.eup %2822  ;;  %v2614_v2 = vpack.c.bf16 %v2776_v59, %v2775_v60  ;;  %v2624_v61 = vpack.c.bf16 %v2781_v62, %v2780_v63 }
 0x488   :  { %v2825_v3 = vpop.eup %2824  ;;  %v2784_v56 = vpop.permute.xlu1 %2783  ;;  %v325_v4 = vmul.f32 %v2823_v58, %v2817_v44 }
 0x489   :  { %v786_v5 = vpop.permute.xlu0 %785  ;;  %v2786_v7 = vunpack.i.h.bf16 %v2784_v56  ;;  %v2785_v8 = vunpack.i.l.bf16 %v2784_v56  ;;  %2615 = vmatprep.subr.bf16.mxu1 %v2614_v2  ;;  %v327_v10 = vmul.f32 %v2825_v3, %v2815_v43 }
 0x48a   :  { %2617 = vmatpush3.bf16.msra.mxu1 %v2614_v2  ;;  %2448 = vmatprep.mubr.msk.f32.mxu1 %vm305_vm3, %v325_v4 }
 0x48b   :  { %v2827_v9 = vpop.eup %2826  ;;  %2625 = vmatprep.subr.bf16.mxu1 %v2624_v61  ;;  %v2628_v15 = vpack.c.bf16 %v2786_v7, %v2785_v8 }
 0x48c   :  { %v2829_v11 = vpop.eup %2828  ;;  %v532_v14 = vmul.f32 %v2827_v9, %v2819_v47  ;;  %v788_v22 = vpop.permute.xlu1 %787 }
 0x48d   :  { %2449 = vmatmul.mubr.msk.f32.vlgmr.msra.gmra.mrb[2].mxu1 %vm305_vm3, %v327_v10  ;;  %v534_v16 = vmul.f32 %v2829_v11, %v2821_v48  ;;  %v2789_v18 = vpop.permute.xlu0 %2788 }
 0x48e   :  { %2627 = vmatpush3.bf16.msra.mxu1 %v2624_v61  ;;  %2462 = vmatprep.mubr.msk.f32.mxu1 %vm305_vm3, %v532_v14  ;;  %v2791_v19 = vunpack.i.h.bf16 %v2789_v18  ;;  %v2790_v20 = vunpack.i.l.bf16 %v2789_v18 }
 0x48f   :  { %2630 = vmatprep.subr.msk.bf16.mxu1 %vm3084_vm2, %v2628_v15 }
 0x490   :  { %v2638_v21 = vpack.c.bf16 %v2791_v19, %v2790_v20  ;;  %v1074_v23 = vpop.permute.xlu1 %1073 }
 0x491   :  { %2463 = vmatmul.mubr.msk.f32.vlgmr.msra.gmra.mrb[4].mxu1 %vm305_vm3, %v534_v16  ;;  %v1076_v24 = vpop.permute.xlu0 %1075  ;;  %v989_v16 = vld [vmem:[%s3553_s3 + $0x10] sm:$0xff] }
 0x492   :  { %2479 = vmatprep.mubr.msk.f32.mxu1 %vm215_vm1, %v786_v5 }
 0x497   :  { %2633 = vmatpush3.bf16.xpose.msk.msra.mxu1 %vm3084_vm2, %v2628_v15 }
 0x498   :  { %2640 = vmatprep.subr.msk.bf16.mxu1 %vm3084_vm2, %v2638_v21 }
 0x49e   :  { %2480 = vmatmul.mubr.msk.f32.vlgmr.msra.gmra.mrb[6].mxu1 %vm215_vm1, %v788_v22 }
 0x49f   :  { %2643 = vmatpush3.bf16.xpose.msk.msra.mxu1 %vm3084_vm2, %v2638_v21  ;;  %2498 = vmatprep.mubr.msk.f32.mxu1 %vm215_vm1, %v1074_v23 }
 0x4a6   :  { %2499 = vmatmul.mubr.msk.f32.vlgmr.msra.gmra.mrb[8].mxu1 %vm215_vm1, %v1076_v24 }
 0x560   :  { %v2450_v27 = vpop.f32.mrb[2].mxu1 }
 0x561   :  { %v408_v28 = vpop.f32.mrb[3].mxu1 }
 0x564   :  { %v2464_v6 = vpop.f32.mrb[4].mxu1 }
 0x565   :  { %v613_v29 = vpop.f32.mrb[5].mxu1 }
 0x566   :  { %2467 = vmatprep.mubr.msk.f32.mxu0 %vm215_vm1, %v613_v29 }
 0x567   :  { %2468 = vmatmul.mubr.msk.f32.vlgmr.msra.gmra.mrb[6].mxu0 %vm215_vm1, %v2464_v6 }
 0x568   :  { %2472 = vmatprep.mubr.msk.f32.mxu0 %vm215_vm1, %v408_v28  ;;  %2471 = vmatpush3.msra.mxu0 %v417_v26  ;;  %v1277_v28 = vld [vmem:[%s3553_s3 + $0x18] sm:$0xff] }
 0x56f   :  { %2473 = vmatmul.mubr.msk.f32.vlgmr.msra.gmra.mrb[6].mxu0 %vm215_vm1, %v2450_v27 }
 0x571   :  { %v2481_v30 = vpop.f32.mrb[6].mxu1 }
 0x572   :  { %v877_v31 = vmul.f32 0.35355338, %v2481_v30  ;;  %v867_v32 = vpop.f32.mrb[7].mxu1 }
 0x573   :  { %v876_v33 = vmul.f32 0.35355338, %v867_v32 }
 0x574   :  { %v879_v34 = vadd.f32 %v877_v31, %v3103_v12 }
 0x575   :  { %v878_v35 = vadd.f32 %v876_v33, %v3108_v17 }
 0x576   :  { %v883_v36 = vsel %vm305_vm3, %v879_v34, -inf }
 0x577   :  { %884 = vmax.xlane.f32.xlu0 %v883_v36  ;;  %v880_v37 = vsel %vm305_vm3, %v878_v35, -inf }
 0x578   :  { %881 = vmax.xlane.f32.xlu1 %v880_v37 }
 0x579   :  { %v2500_v38 = vpop.f32.mrb[8].mxu1 }
 0x57a   :  { %v1155_v39 = vpop.f32.mrb[9].mxu1  ;;  %v1165_v50 = vmul.f32 0.35355338, %v2500_v38 }
 0x57b   :  { %v1164_v47 = vmul.f32 0.35355338, %v1155_v39  ;;  %v1597_v39 = vld [vmem:[%s3559_s9 + $0x8] sm:$0xff] }
 0x57c   :  { %v1167_v55 = vadd.f32 %v1165_v50, %v3103_v12 }
 0x57d   :  { %v1166_v52 = vadd.f32 %v1164_v47, %v3108_v17  ;;  %v1390_v47 = vld [vmem:[%s3558_s8 + $0x10] sm:$0xff] }
 0x57e   :  { %v1171_v57 = vsel %vm305_vm3, %v1167_v55, -inf }
 0x57f   :  { %v1168_v54 = vsel %vm305_vm3, %v1166_v52, -inf }
 0x604   :  { %v885_v40 = vpop.xlane.xlu0 %884 }
 0x605   :  { %v887_v42 = vsub.f32 %v879_v34, %v885_v40  ;;  %v882_v43 = vpop.xlane.xlu1 %881 }
 0x606   :  { %v886_v44 = vsub.f32 %v878_v35, %v882_v43  ;;  %v1596_v43 = vld [vmem:[%s3559_s9] sm:$0xff] }
 0x607   :  { %v890_v45 = vmul.f32 1.442695, %v887_v42  ;;  %v1601_v42 = vld [vmem:[%s3559_s9 + $0x28] sm:$0xff] }
 0x608   :  { %v888_v46 = vmul.f32 1.442695, %v886_v44  ;;  %v1600_v44 = vld [vmem:[%s3559_s9 + $0x20] sm:$0xff] }
 0x609   :  { %2830 = vpow2.f32 %v890_v45  ;;  %v2656_v45 = vpack.c.bf16 %v1601_v42, %v1597_v39 }
 0x60a   :  { %2832 = vpow2.f32 %v888_v46  ;;  %v2658_v46 = vpack.c.bf16 %v1600_v44, %v1596_v43 }
 0x613   :  { %v2831_v48 = vpop.eup %2830 }
 0x614   :  { %v2833_v49 = vpop.eup %2832  ;;  %v895_v51 = vsel %vm305_vm3, %v2831_v48, 0.0 }
 0x615   :  { %896 = vadd.xlane.f32.xlu1 %v895_v51  ;;  %v892_v53 = vsel %vm305_vm3, %v2833_v49, 0.0  ;;  %v1609_v51 = vld [vmem:[%s3559_s9 + $0x68] sm:$0xff] }
 0x616   :  { %893 = vadd.xlane.f32.xlu0 %v892_v53  ;;  %v1608_v53 = vld [vmem:[%s3559_s9 + $0x60] sm:$0xff] }
 0x619   :  { %1169 = vmax.xlane.f32.xlu1 %v1168_v54 }
 0x61d   :  { %1172 = vmax.xlane.f32.xlu1 %v1171_v57  ;;  %v1599_v57 = vld [vmem:[%s3559_s9 + $0x18] sm:$0xff] }
 0x62c   :  { %2793 = vrot.lane.b32.xlu0 %v3064_v41, %s2929_s20 }
 0x6a2   :  { %v897_v59 = vpop.xlane.xlu1 %896 }
 0x6a3   :  { %2834 = vrcp.f32 %v897_v59  ;;  %v894_v60 = vpop.xlane.xlu0 %893  ;;  %v1603_v59 = vld [vmem:[%s3559_s9 + $0x38] sm:$0xff] }
 0x6a4   :  { %2836 = vrcp.f32 %v894_v60  ;;  %v2664_v60 = vpack.c.bf16 %v1603_v59, %v1599_v57 }
 0x6a6   :  { %v1170_v17 = vpop.xlane.xlu1 %1169 }
 0x6a7   :  { %v2794_v62 = vpop.permute.xlu0 %2793  ;;  %v1174_v2 = vsub.f32 %v1166_v52, %v1170_v17  ;;  %v1604_v52 = vld [vmem:[%s3559_s9 + $0x40] sm:$0xff] }
 0x6a8   :  { %v2796_v63 = vunpack.i.h.bf16 %v2794_v62  ;;  %v2795_v58 = vunpack.i.l.bf16 %v2794_v62 }
 0x6a9   :  { %v1176_v61 = vmul.f32 1.442695, %v1174_v2 }
 0x6aa   :  { %v2634_v3 = vpack.c.bf16 %v2796_v63, %v2795_v58  ;;  %v1173_v56 = vpop.xlane.xlu1 %1172 }
 0x6ab   :  { %v1175_v4 = vsub.f32 %v1167_v55, %v1173_v56  ;;  %v2662_v55 = vpack.c.bf16 %v1608_v53, %v1604_v52 }
 0x6ac   :  { %2635 = vmatprep.subr.bf16.mxu0 %v2634_v3 }
 0x6ad   :  { %v2835_v12 = vpop.eup %2834  ;;  %v1178_v5 = vmul.f32 1.442695, %v1175_v4  ;;  %2637 = vmatpush3.bf16.msra.mxu0 %v2634_v3 }
 0x6ae   :  { %v2837_v7 = vpop.eup %2836  ;;  %v901_v9 = vmul.f32 %v2835_v12, %v2831_v48  ;;  %2489 = vmatprep.subr.mxu0 %v989_v16  ;;  %v1391_v48 = vld [vmem:[%s3558_s8 + $0x18] sm:$0xff] }
 0x6af   :  { %2838 = vpow2.f32 %v1178_v5  ;;  %v899_v8 = vmul.f32 %v2837_v7, %v2833_v49  ;;  %v1605_v49 = vld [vmem:[%s3559_s9 + $0x48] sm:$0xff]  ;;  %v2652_v50 = vpack.c.bf16 %v1391_v48, %v1390_v47  ;;  %v1598_v5 = vld [vmem:[%s3559_s9 + $0x10] sm:$0xff] }
 0x6b0   :  { %2840 = vpow2.f32 %v1176_v61  ;;  %v2660_v54 = vpack.c.bf16 %v1609_v51, %v1605_v49  ;;  %v2324_v61 = vld [vmem:[%s3557_s7] ss:$0 sm:$0xff]  ;;  %v1602_v7 = vld [vmem:[%s3559_s9 + $0x30] sm:$0xff]  ;;  %v1496_v49 = vlaneseq }
 0x6b1   :  { %2486 = vmatprep.mubr.msk.f32.mxu0 %vm305_vm3, %v899_v8 }
 0x6b2   :  { %2487 = vmatmul.mubr.msk.f32.vlgmr.msra.gmra.mrb[8].mxu0 %vm305_vm3, %v901_v9  ;;  %v1607_v9 = vld [vmem:[%s3559_s9 + $0x58] sm:$0xff] }
 0x6b3   :  { %2490 = vmatpush3.msra.mxu0 %v989_v16 }
 0x6b9   :  { %v2839_v10 = vpop.eup %2838 }
 0x6ba   :  { %v1183_v11 = vsel %vm305_vm3, %v2839_v10, 0.0  ;;  %v2841_v14 = vpop.eup %2840 }
 0x6bb   :  { %1184 = vadd.xlane.f32.xlu1 %v1183_v11  ;;  %v1180_v15 = vsel %vm305_vm3, %v2841_v14, 0.0 }
 0x6bf   :  { %1181 = vadd.xlane.f32.xlu1 %v1180_v15 }
 0x6d0   :  { %2798 = vrot.lane.b32.xlu1 %v3064_v41, %s2930_s21 }
 0x748   :  { %v1185_v18 = vpop.xlane.xlu1 %1184 }
 0x74c   :  { %v1182_v19 = vpop.xlane.xlu1 %1181 }
 0x74d   :  { %2842 = vrcp.f32 %v1182_v19  ;;  %v1610_v19 = vld [vmem:[%s3559_s9 + $0x70] sm:$0xff] }
 0x74e   :  { %2844 = vrcp.f32 %v1185_v18  ;;  %v1606_v18 = vld [vmem:[%s3559_s9 + $0x50] sm:$0xff] }
 0x750   :  { %v2799_v20 = vpop.permute.xlu1 %2798 }
 0x751   :  { %v2801_v21 = vunpack.i.h.bf16 %v2799_v20  ;;  %v2800_v22 = vunpack.i.l.bf16 %v2799_v20  ;;  %v2670_v20 = vpack.c.bf16 %v1610_v19, %v1606_v18  ;;  %v1794_v18 = vld [vmem:[%s3560_s10 + $0x20] sm:$0xff]  ;;  %v1795_v19 = vld [vmem:[%s3560_s10 + $0x28] sm:$0xff] }
 0x753   :  { %v2644_v23 = vpack.c.bf16 %v2801_v21, %v2800_v22 }
 0x755   :  { %2645 = vmatprep.subr.bf16.mxu0 %v2644_v23 }
 0x757   :  { %v2843_v24 = vpop.eup %2842 }
 0x758   :  { %v2845_v27 = vpop.eup %2844  ;;  %v1187_v41 = vmul.f32 %v2843_v24, %v2841_v14  ;;  %v2666_v14 = vpack.c.bf16 %v1602_v7, %v1598_v5 }
 0x759   :  { %v1189_v6 = vmul.f32 %v2845_v27, %v2839_v10  ;;  %v1611_v10 = vld [vmem:[%s3559_s9 + $0x78] sm:$0xff] }
 0x75a   :  { %v2668_v16 = vpack.c.bf16 %v1611_v10, %v1607_v9 }
 0x785   :  { %v2488_v25 = vpop.f32.mrb[8].mxu0 }
 0x786   :  { %v980_v26 = vpop.f32.mrb[9].mxu0 }
 0x787   :  { %2491 = vmatprep.mubr.msk.f32.mxu0 %vm215_vm1, %v980_v26 }
 0x788   :  { %2492 = vmatmul.mubr.msk.f32.vlgmr.msra.gmra.mrb[6].mxu0 %vm215_vm1, %v2488_v25 }
 0x789   :  { %2647 = vmatpush3.bf16.msra.mxu0 %v2644_v23  ;;  %2505 = vmatprep.mubr.msk.f32.mxu0 %vm305_vm3, %v1187_v41 }
 0x78a   :  { %2508 = vmatprep.subr.mxu0 %v1277_v28 }
 0x78c   :  { %2506 = vmatmul.mubr.msk.f32.vlgmr.msra.gmra.mrb[10].mxu0 %vm305_vm3, %v1189_v6 }
 0x78d   :  { %2509 = vmatpush3.msra.mxu0 %v1277_v28 }
 0x78e   :  { %2657 = vmatprep.subr.bf16.mxu0 %v2656_v45 }
 0x85f   :  { %v2507_v29 = vpop.f32.mrb[10].mxu0 }
 0x860   :  { %v1268_v30 = vpop.f32.mrb[11].mxu0 }
 0x861   :  { %2510 = vmatprep.mubr.msk.f32.mxu0 %vm215_vm1, %v1268_v30 }
 0x862   :  { %2511 = vmatmul.mubr.msk.f32.vlgmr.msra.gmra.mrb[6].mxu0 %vm215_vm1, %v2507_v29 }
 0x863   :  { %1676 = vmatprep.mubr.f32.mxu0 %v2918_v13  ;;  %2659 = vmatpush1.bf16.msra.mxu0 %v2658_v46 }
 0x864   :  { %2661 = vmatprep.subr.bf16.mxu0 %v2660_v54 }
 0x867   :  { %2663 = vmatpush1.bf16.msra.mxu0 %v2662_v55 }
 0x935   :  { %v2512_v31 = vpop.f32.mrb[6].mxu0 }
 0x936   :  { %v3187_v32 = vadd.f32 %v2512_v31, %v3006_v1  ;;  %v1350_v33 = vpop.f32.mrb[7].mxu0  ;;  %v1388_v1 = vld [vmem:[%s3558_s8] sm:$0xff] }
 0x937   :  { %v3190_v34 = vadd.f32 %v1350_v33, %v3001_v0  ;;  %v1389_v0 = vld [vmem:[%s3558_s8 + $0x8] sm:$0xff] }
 0x938   :  { %v1364_v35 = vmul.f32 %v3187_v32, %v3187_v32  ;;  %v2648_v40 = vpack.c.bf16 %v1389_v0, %v1388_v1 }
 0x939   :  { %v1363_v36 = vmul.f32 %v3190_v34, %v3190_v34 }
 0x93a   :  { %v1368_v37 = vsel %vm43_vm0, %v1364_v35, 0.0  ;;  %2649 = vmatprep.subr.bf16.mxu1 %v2648_v40 }
 0x93b   :  { %1369 = vadd.xlane.f32.xlu1 %v1368_v37  ;;  %v1365_v38 = vsel %vm43_vm0, %v1363_v36, 0.0  ;;  %2651 = vmatpush3.bf16.msra.mxu1 %v2648_v40 }
 0x93c   :  { %1366 = vadd.xlane.f32.xlu0 %v1365_v38  ;;  %2653 = vmatprep.subr.bf16.mxu1 %v2652_v50 }
 0x93f   :  { %2655 = vmatpush3.bf16.msra.mxu1 %v2652_v50  ;;  %v3300_v50 = vand.u32 127, %v1496_v49 }
 0x940   :  { %2665 = vmatprep.subr.bf16.mxu1 %v2664_v60 }
 0x9c8   :  { %v1370_v17 = vpop.xlane.xlu1 %1369 }
 0x9c9   :  { %v1372_v62 = vmul.f32 0.03125, %v1370_v17  ;;  %v1367_v63 = vpop.xlane.xlu0 %1366 }
 0x9ca   :  { %v1371_v58 = vmul.f32 0.03125, %v1367_v63  ;;  %v1790_v63 = vld [vmem:[%s3560_s10] sm:$0xff] }
 0x9cb   :  { %v1374_v2 = vadd.f32 1e-05, %v1372_v62 }
 0x9cc   :  { %v1373_v3 = vadd.f32 1e-05, %v1371_v58  ;;  %v1791_v58 = vld [vmem:[%s3560_s10 + $0x8] sm:$0xff] }
 0x9cd   :  { %2846 = vrsqrt.f32 %v1374_v2  ;;  %v1792_v2 = vld [vmem:[%s3560_s10 + $0x10] sm:$0xff] }
 0x9ce   :  { %2848 = vrsqrt.f32 %v1373_v3  ;;  %v2672_v3 = vpack.c.bf16 %v1791_v58, %v1790_v63 }
 0x9d0   :  { %2673 = vmatprep.subr.bf16.mxu0 %v2672_v3 }
 0x9d7   :  { %v2847_v56 = vpop.eup %2846 }
 0x9d8   :  { %v2849_v4 = vpop.eup %2848  ;;  %v1378_v12 = vmul.f32 %v2847_v56, %v3187_v32  ;;  %v1793_v56 = vld [vmem:[%s3560_s10 + $0x18] sm:$0xff] }
 0x9d9   :  { %v1377_v8 = vmul.f32 %v2849_v4, %v3190_v34  ;;  %v1918_v4 = vld [vmem:[%s3560_s10 + $0x40] sm:$0xff] }
 0x9da   :  { %v1387_v15 = vmul.f32 %v2324_v61, %v1378_v12  ;;  %v1919_v12 = vld [vmem:[%s3560_s10 + $0x48] sm:$0xff] }
 0x9db   :  { %v1386_v11 = vmul.f32 %v2324_v61, %v1377_v8  ;;  %v2676_v61 = vpack.c.bf16 %v1793_v56, %v1792_v2  ;;  %v2688_v5 = vpack.c.bf16 %v1919_v12, %v1918_v4 }
 0x9dd   :  { %2521 = vmatprep.mubr.msk.f32.mxu1 %vm43_vm0, %v1386_v11  ;;  %2327 = vmatmul.mubr.msk.f32.vlgmr.msra.gmra.mrb[12].mxu0 %vm43_vm0, %v1386_v11 }
 0x9de   :  { %2522 = vmatmul.mubr.msk.f32.vlgmr.msra.gmra.mrb[10].mxu1 %vm43_vm0, %v1387_v15  ;;  %1682 = vmatprep.mubr.f32.mxu0 %v2918_v13 }
 0x9df   :  { %2667 = vmatpush1.bf16.msra.mxu1 %v2666_v14  ;;  %1753 = vmatprep.mubr.f32.mxu1 %v2918_v13 }
 0x9e0   :  { %2669 = vmatprep.subr.bf16.mxu1 %v2668_v16  ;;  %2675 = vmatpush3.bf16.msra.mxu0 %v2672_v3 }
 0x9e1   :  { %2328 = vmatmul.mubr.msk.f32.gmra.mrb[14].mxu0 %vm43_vm0, %v1387_v15  ;;  %2677 = vmatprep.subr.bf16.mxu0 %v2676_v61 }
 0x9e3   :  { %2671 = vmatpush1.bf16.msra.mxu1 %v2670_v20  ;;  %v2680_v20 = vpack.c.bf16 %v1795_v19, %v1794_v18 }
 0x9e4   :  { %2689 = vmatprep.subr.bf16.mxu1 %v2688_v5  ;;  %2679 = vmatpush3.bf16.msra.mxu0 %v2676_v61 }
 0x9e5   :  { %2681 = vmatprep.subr.bf16.mxu0 %v2680_v20 }
 0x9e6   :  { %2329 = vmatmul.mubr.msk.f32.vlgmr.msra.gmra.mrb[12].mxu1 %vm43_vm0, %v1386_v11 }
 0x9e7   :  { %1759 = vmatprep.mubr.f32.mxu1 %v2918_v13  ;;  %2691 = vmatpush3.bf16.msra.mxu1 %v2688_v5 }
 0x9e8   :  { %2683 = vmatpush3.bf16.msra.mxu0 %v2680_v20 }
 0x9ea   :  { %2330 = vmatmul.mubr.msk.f32.gmra.mrb[14].mxu1 %vm43_vm0, %v1387_v15 }
 0xab0   :  { %v3272_v21 = vpop.f32.mrb[12].mxu0 }
 0xab1   :  { %v2523_v22 = vpop.f32.mrb[10].mxu1  ;;  %v3274_v23 = vpop.f32.mrb[13].mxu0 }
 0xab2   :  { %v1464_v24 = vpop.f32.mrb[11].mxu1  ;;  %v1477_v41 = vsel %vm1473_vm4, %v2523_v22, -inf  ;;  %v2335_v49 = vmul.f32 -1.442695, %v3274_v23 }
 0xab3   :  { %v1474_v25 = vsel %vm1473_vm4, %v1464_v24, -inf }
 0xab4   :  { %v3277_v26 = vpop.f32.mrb[14].mxu0  ;;  %1475 = vmax.xlane.f32.xlu0 %v1474_v25 }
 0xab5   :  { %v3279_v27 = vpop.f32.mrb[15].mxu0 }
 0xab8   :  { %1478 = vmax.xlane.f32.xlu0 %v1477_v41  ;;  %v1796_v41 = vld [vmem:[%s3560_s10 + $0x30] sm:$0xff] }
 0xab9   :  { %v3282_v13 = vpop.f32.mrb[12].mxu1 }
 0xaba   :  { %v3284_v28 = vpop.f32.mrb[13].mxu1 }
 0xabd   :  { %v3286_v6 = vpop.f32.mrb[14].mxu1 }
 0xabe   :  { %v3288_v29 = vpop.f32.mrb[15].mxu1 }
 0xb41   :  { %v1476_v30 = vpop.xlane.xlu0 %1475 }
 0xb42   :  { %v1480_v31 = vsub.f32 %v1464_v24, %v1476_v30  ;;  %v1921_v24 = vld [vmem:[%s3560_s10 + $0x58] sm:$0xff] }
 0xb43   :  { %v1797_v30 = vld [vmem:[%s3560_s10 + $0x38] sm:$0xff] }
 0xb44   :  { %v1482_v33 = vmul.f32 1.442695, %v1480_v31  ;;  %v2684_v31 = vpack.c.bf16 %v1797_v30, %v1796_v41 }
 0xb45   :  { %v1479_v35 = vpop.xlane.xlu0 %1478 }
 0xb46   :  { %2850 = vpow2.f32 %v1482_v33  ;;  %v1481_v36 = vsub.f32 %v2523_v22, %v1479_v35  ;;  %v1920_v22 = vld [vmem:[%s3560_s10 + $0x50] sm:$0xff]  ;;  %v1922_v33 = vld [vmem:[%s3560_s10 + $0x60] sm:$0xff]  ;;  %v1923_v35 = vld [vmem:[%s3560_s10 + $0x68] sm:$0xff]  ;;  %2685 = vmatprep.subr.bf16.mxu0 %v2684_v31 }
 0xb47   :  { %v2692_v25 = vpack.c.bf16 %v1921_v24, %v1920_v22  ;;  %2687 = vmatpush3.bf16.msra.mxu0 %v2684_v31 }
 0xb48   :  { %v1484_v37 = vmul.f32 1.442695, %v1481_v36  ;;  %v2696_v36 = vpack.c.bf16 %v1923_v35, %v1922_v33 }
 0xb49   :  { %2693 = vmatprep.subr.bf16.mxu1 %v2692_v25 }
 0xb4a   :  { %2852 = vpow2.f32 %v1484_v37  ;;  %2695 = vmatpush3.bf16.msra.mxu1 %v2692_v25  ;;  %v2043_v37 = vld [vmem:[%s3560_s10 + $0x80] sm:$0xff]  ;;  %v2046_v25 = vld [vmem:[%s3560_s10 + $0x98] sm:$0xff] }
 0xb4b   :  { %2697 = vmatprep.subr.bf16.mxu1 %v2696_v36 }
 0xb4e   :  { %2699 = vmatpush3.bf16.msra.mxu1 %v2696_v36 }
 0xb50   :  { %v2851_v38 = vpop.eup %2850 }
 0xb51   :  { %v1486_v1 = vsel %vm1473_vm4, %v2851_v38, 0.0 }
 0xb52   :  { %1487 = vadd.xlane.f32.xlu0 %v1486_v1 }
 0xb54   :  { %v2853_v0 = vpop.eup %2852 }
 0xb55   :  { %v1489_v39 = vsel %vm1473_vm4, %v2853_v0, 0.0 }
 0xb56   :  { %1490 = vadd.xlane.f32.xlu0 %v1489_v39  ;;  %v1925_v39 = vld [vmem:[%s3560_s10 + $0x78] sm:$0xff] }
 0xbdf   :  { %v1488_v40 = vpop.xlane.xlu0 %1487 }
 0xbe0   :  { %2854 = vrcp.f32 %v1488_v40 }
 0xbe3   :  { %v1491_v42 = vpop.xlane.xlu0 %1490 }
 0xbe4   :  { %2856 = vrcp.f32 %v1491_v42  ;;  %v2168_v42 = vld [vmem:[%s3560_s10 + $0xc0] sm:$0xff] }
 0xbea   :  { %v2855_v43 = vpop.eup %2854 }
 0xbeb   :  { %v3292_v44 = vmul.f32 %v2855_v43, %v2851_v38  ;;  %v2044_v38 = vld [vmem:[%s3560_s10 + $0x88] sm:$0xff] }
 0xbec   :  { %v3372_v1 = vpack.c.bf16 %v2044_v38, %v2043_v37  ;;  %v2169_v43 = vld [vmem:[%s3560_s10 + $0xc8] sm:$0xff] }
 0xbed   :  { %v1498_v45 = vsel %vm1473_vm4, %v3292_v44, -inf }
 0xbee   :  { %v2857_v46 = vpop.eup %2856  ;;  %1499 = vmax.xlane.f32.xlu0 %v1498_v45  ;;  %2705 = vmatprep.subr.bf16.mxu0 %v3372_v1  ;;  %v3395_v45 = vpack.c.bf16 %v2169_v43, %v2168_v42  ;;  %v2171_v43 = vld [vmem:[%s3560_s10 + $0xd8] sm:$0xff] }
 0xbef   :  { %v3296_v47 = vmul.f32 %v2857_v46, %v2853_v0  ;;  %v1924_v0 = vld [vmem:[%s3560_s10 + $0x70] sm:$0xff]  ;;  %v2331_v46 = vmul.f32 -1.442695, %v3272_v21 }
 0xbf0   :  { %v2700_v40 = vpack.c.bf16 %v1925_v39, %v1924_v0  ;;  %v2048_v0 = vld [vmem:[%s3560_s10 + $0xa8] sm:$0xff] }
 0xbf1   :  { %v1501_v48 = vsel %vm1473_vm4, %v3296_v47, -inf  ;;  %2858 = vpow2.f32 %v2331_v46 }
 0xbf2   :  { %1502 = vmax.xlane.f32.xlu1 %v1501_v48  ;;  %2701 = vmatprep.subr.bf16.mxu1 %v2700_v40  ;;  %v2332_v48 = vmul.f32 -1.442695, %v3277_v26 }
 0xbf3   :  { %2703 = vmatpush3.bf16.msra.mxu1 %v2700_v40 }
 0xbf4   :  { %2721 = vmatprep.subr.bf16.mxu1 %v3395_v45  ;;  %2860 = vpow2.f32 %v2332_v48 }
 0xbf5   :  { %2862 = vpow2.f32 %v2335_v49 }
 0xc7b   :  { %v3302_v51 = vpop.xlane.xlu0 %1499 }
 0xc7c   :  { %vm1504_vm5 = vcmp.eq.f32.partialorder %v3292_v44, %v3302_v51 }
 0xc7d   :  { %v1506_v52 = vsel %vm1504_vm5, %v3300_v50, 4 }
 0xc7e   :  { %v1508_v53 = vsel %vm1473_vm4, %v1506_v52, 2147483647  ;;  %v2336_v52 = vmul.f32 -1.442695, %v3279_v27 }
 0xc7f   :  { %v3308_v54 = vpop.xlane.xlu1 %1502  ;;  %v1510_v55 = vshra.s32 %v1508_v53, 16  ;;  %v1509_v7 = vand.u32 65535, %v1508_v53  ;;  %v2339_v53 = vmul.f32 -1.442695, %v3282_v13 }
 0xc80   :  { %vm1505_vm6 = vcmp.eq.f32.partialorder %v3296_v47, %v3308_v54  ;;  %2864 = vpow2.f32 %v2336_v52 }
 0xc81   :  { %v1512_v57 = vcvt.s32.f32 %v1510_v55  ;;  %v1507_v59 = vsel %vm1505_vm6, %v3300_v50, 4  ;;  %v1511_v9 = vcvt.s32.f32 %v1509_v7  ;;  %v2859_v55 = vpop.eup %2858  ;;  %2866 = vpow2.f32 %v2339_v53 }
 0xc82   :  { %v1523_v60 = vsel %vm1473_vm4, %v1507_v59, 2147483647  ;;  %v2861_v59 = vpop.eup %2860 }
 0xc83   :  { %1513 = vmin.xlane.f32.xlu0 %v1512_v57  ;;  %v1525_v17 = vshra.s32 %v1523_v60, 16  ;;  %v1524_v10 = vand.u32 65535, %v1523_v60  ;;  %v2340_v60 = vmul.f32 -1.442695, %v3286_v6 }
 0xc85   :  { %v1527_v62 = vcvt.s32.f32 %v1525_v17  ;;  %v1526_v15 = vcvt.s32.f32 %v1524_v10  ;;  %v1773_v17 = vadd.f32 1.0, %v2861_v59 }
 0xc87   :  { %1528 = vmin.xlane.f32.xlu1 %v1527_v62 }
 0xd10   :  { %v3332_v8 = vpop.xlane.xlu0 %1513 }
 0xd11   :  { %vm1515_vm7 = vcmp.eq.f32.partialorder %v1512_v57, %v3332_v8  ;;  %v1772_v57 = vadd.f32 1.0, %v2859_v55  ;;  %v1520_v56 = vcvt.f32.s32 %v3332_v8 }
 0xd12   :  { %v1516_v11 = vsel %vm1515_vm7, %v1511_v9, inf }
 0xd13   :  { %1517 = vmin.xlane.f32.xlu0 %v1516_v11  ;;  %2868 = vrcp.f32 %v1772_v57  ;;  %v1521_v5 = vshll.u32 %v1520_v56, 16  ;;  %v2050_v57 = vld [vmem:[%s3560_s10 + $0xb8] sm:$0xff] }
 0xd14   :  { %v3335_v14 = vpop.xlane.xlu1 %1528  ;;  %2870 = vpow2.f32 %v2340_v60  ;;  %v2175_v56 = vld [vmem:[%s3560_s10 + $0xf8] sm:$0xff] }
 0xd15   :  { %vm1530_vm8 = vcmp.eq.f32.partialorder %v1527_v62, %v3335_v14  ;;  %v2863_v62 = vpop.eup %2862  ;;  %2872 = vrcp.f32 %v1773_v17  ;;  %v1535_v7 = vcvt.f32.s32 %v3335_v14 }
 0xd16   :  { %v1531_v16 = vsel %vm1530_vm8, %v1526_v15, inf  ;;  %v2865_v63 = vpop.eup %2864  ;;  %v1900_v58 = vadd.f32 1.0, %v2863_v62 }
 0xd17   :  { %1532 = vmin.xlane.f32.xlu1 %v1531_v16  ;;  %v2867_v2 = vpop.eup %2866  ;;  %v1901_v3 = vadd.f32 1.0, %v2865_v63  ;;  %v1536_v8 = vshll.u32 %v1535_v7, 16 }
 0xd18   :  { %2874 = vrcp.f32 %v1900_v58  ;;  %v2025_v4 = vadd.f32 1.0, %v2867_v2  ;;  %v2172_v2 = vld [vmem:[%s3560_s10 + $0xe0] sm:$0xff] }
 0xd19   :  { %2876 = vrcp.f32 %v1901_v3 }
 0xd1a   :  { %2878 = vrcp.f32 %v2025_v4 }
 0xd1d   :  { %v2869_v12 = vpop.eup %2868 }
 0xd1e   :  { %v2871_v10 = vpop.eup %2870  ;;  %v1778_v15 = vmul.f32 %v2869_v12, %v3272_v21  ;;  %v2343_v12 = vmul.f32 -1.442695, %v3284_v28 }
 0xd1f   :  { %v2873_v16 = vpop.eup %2872  ;;  %v2026_v24 = vadd.f32 1.0, %v2871_v10 }
 0xd20   :  { %v1779_v30 = vmul.f32 %v2873_v16, %v3277_v26 }
 0xd21   :  { %2880 = vrcp.f32 %v2026_v24 }
 0xd22   :  { %v2875_v33 = vpop.eup %2874  ;;  %2882 = vpow2.f32 %v2343_v12 }
 0xd23   :  { %v2877_v35 = vpop.eup %2876  ;;  %v1906_v42 = vmul.f32 %v2875_v33, %v3274_v23 }
 0xd24   :  { %v2879_v46 = vpop.eup %2878  ;;  %v1907_v48 = vmul.f32 %v2877_v35, %v3279_v27 }
 0xd28   :  { %1784 = vrot.lane.b32.xlu1 %v3277_v26, %s2925_s12  ;;  %v2047_v26 = vld [vmem:[%s3560_s10 + $0xa0] sm:$0xff] }
 0xd29   :  { %1782 = vrot.lane.b32.xlu0 %v3272_v21, %s2925_s12  ;;  %v2045_v21 = vld [vmem:[%s3560_s10 + $0x90] sm:$0xff]  ;;  %v2712_v53 = vpack.c.bf16 %v2048_v0, %v2047_v26 }
 0xd2a   :  { %v2708_v37 = vpack.c.bf16 %v2046_v25, %v2045_v21 }
 0xd2b   :  { %v2881_v62 = vpop.eup %2880 }
 0xd2c   :  { %1910 = vrot.lane.b32.xlu1 %v3274_v23, %s2925_s12  ;;  %v2049_v23 = vld [vmem:[%s3560_s10 + $0xb0] sm:$0xff]  ;;  %v2032_v58 = vmul.f32 %v2881_v62, %v3286_v6 }
 0xd2d   :  { %1912 = vrot.lane.b32.xlu0 %v3279_v27, %s2925_s12  ;;  %v2031_v27 = vmul.f32 %v2879_v46, %v3282_v13  ;;  %v2716_v17 = vpack.c.bf16 %v2050_v57, %v2049_v23 }
 0xd30   :  { %2035 = vrot.lane.b32.xlu1 %v3282_v13, %s2925_s12 }
 0xd31   :  { %2037 = vrot.lane.b32.xlu0 %v3286_v6, %s2925_s12  ;;  %v2174_v6 = vld [vmem:[%s3560_s10 + $0xf0] sm:$0xff] }
 0xd32   :  { %v2732_v4 = vpack.c.bf16 %v2175_v56, %v2174_v6 }
 0xda0   :  { %v1518_v61 = vpop.xlane.xlu0 %1517 }
 0xda1   :  { %v1519_v9 = vcvt.f32.s32 %v1518_v61  ;;  %v2344_v61 = vmul.f32 -1.442695, %v3288_v29 }
 0xda3   :  { %v3406_v11 = vadd.s32 %v1521_v5, %v1519_v9  ;;  %2884 = vpow2.f32 %v2344_v61  ;;  %v2883_v5 = vpop.eup %2882 }
 0xda4   :  { %v1533_v18 = vpop.xlane.xlu1 %1532  ;;  %v1783_v19 = vpop.permute.xlu0 %1782  ;;  %v2150_v9 = vadd.f32 1.0, %v2883_v5 }
 0xda5   :  { %v1534_v20 = vcvt.f32.s32 %v1533_v18  ;;  %v1788_v22 = vmul.f32 %v1783_v19, %v1778_v15  ;;  %vm1538_vm10 = vcmp.eq.s32.totalorder %v3300_v50, %v3406_v11  ;;  %v2933_v11 = vmov 1  }
 0xda6   :  { %v3415_v14 = vsel %vm1538_vm10, -inf, %v3292_v44  ;;  %2886 = vrcp.f32 %v2150_v9 }
 0xda7   :  { %v3423_v41 = vadd.s32 %v1536_v8, %v1534_v20  ;;  %2540 = vmatprep.mubr.msk.f32.mxu0 %vm1798_vm9, %v1788_v22  ;;  %v1542_v31 = vsel %vm1473_vm4, %v3415_v14, -inf }
 0xda8   :  { %v1785_v44 = vpop.permute.xlu1 %1784  ;;  %1543 = vmax.xlane.f32.xlu0 %v1542_v31  ;;  %v1913_v39 = vpop.permute.xlu0 %1912 }
 0xda9   :  { %v1789_v36 = vmul.f32 %v1785_v44, %v1779_v30  ;;  %vm1539_vm11 = vcmp.eq.s32.totalorder %v3300_v50, %v3423_v41  ;;  %v1917_v55 = vmul.f32 %v1913_v39, %v1907_v48 }
 0xdaa   :  { %v3435_v38 = vsel %vm1539_vm11, -inf, %v3296_v47  ;;  %v2170_v47 = vld [vmem:[%s3560_s10 + $0xd0] sm:$0xff]  ;;  %v1585_v61 = vsel %vm1539_vm11, %v3308_v54, 0.0 }
 0xdab   :  { %2541 = vmatmul.mubr.msk.f32.vlgmr.msra.gmra.mrb[16].mxu0 %vm1798_vm9, %v1789_v36  ;;  %v1545_v40 = vsel %vm1473_vm4, %v3435_v38, -inf  ;;  %v2724_v59 = vpack.c.bf16 %v2171_v43, %v2170_v47 }
 0xdac   :  { %2707 = vmatpush3.bf16.msra.mxu0 %v3372_v1  ;;  %1546 = vmax.xlane.f32.xlu1 %v1545_v40  ;;  %v1911_v49 = vpop.permute.xlu1 %1910  ;;  %v2038_v63 = vpop.permute.xlu0 %2037 }
 0xdad   :  { %v1916_v52 = vmul.f32 %v1911_v49, %v1906_v42  ;;  %2709 = vmatprep.subr.bf16.mxu0 %v2708_v37  ;;  %v2042_v13 = vmul.f32 %v2038_v63, %v2032_v58  ;;  %v2885_v7 = vpop.eup %2884 }
 0xdae   :  { %v2151_v10 = vadd.f32 1.0, %v2885_v7 }
 0xdaf   :  { %2559 = vmatprep.mubr.msk.f32.mxu1 %vm1798_vm9, %v1916_v52 }
 0xdb0   :  { %2711 = vmatpush3.bf16.msra.mxu0 %v2708_v37  ;;  %v2036_v1 = vpop.permute.xlu1 %2035  ;;  %2560 = vmatmul.mubr.msk.f32.vlgmr.msra.gmra.mrb[16].mxu1 %vm1798_vm9, %v1917_v55  ;;  %2888 = vrcp.f32 %v2151_v10  ;;  %v2887_v19 = vpop.eup %2886 }
 0xdb1   :  { %v2041_v60 = vmul.f32 %v2036_v1, %v2031_v27  ;;  %2713 = vmatprep.subr.bf16.mxu0 %v2712_v53  ;;  %2723 = vmatpush3.bf16.msra.mxu1 %v3395_v45  ;;  %v2173_v45 = vld [vmem:[%s3560_s10 + $0xe8] sm:$0xff]  ;;  %v2156_v30 = vmul.f32 %v2887_v19, %v3284_v28  ;;  %s2935_s10 = smov [#allocation2]  }
 0xdb2   :  { %2725 = vmatprep.subr.bf16.mxu1 %v2724_v59  ;;  %v2728_v3 = vpack.c.bf16 %v2173_v45, %v2172_v2  ;;  %v1584_v45 = vsel %vm1538_vm10, %v3302_v51, 0.0 }
 0xdb3   :  { %2578 = vmatprep.mubr.msk.f32.mxu0 %vm1798_vm9, %v2041_v60 }
 0xdb4   :  { %2715 = vmatpush3.bf16.msra.mxu0 %v2712_v53  ;;  %v2931_v53 = vmov 0  }
 0xdb5   :  { %2717 = vmatprep.subr.bf16.mxu0 %v2716_v17  ;;  %2727 = vmatpush3.bf16.msra.mxu1 %v2724_v59 }
 0xdb6   :  { %2729 = vmatprep.subr.bf16.mxu1 %v2728_v3  ;;  %2802 = vset.pattern.permute.xlu0 %v2931_v53 }
 0xdb7   :  { %2803 = vset.pattern.permute.xlu1 %v2931_v53 }
 0xdb8   :  { %2719 = vmatpush3.bf16.msra.mxu0 %v2716_v17 }
 0xdb9   :  { %2731 = vmatpush3.bf16.msra.mxu1 %v2728_v3 }
 0xdba   :  { %2733 = vmatprep.subr.bf16.mxu1 %v2732_v4  ;;  %v2889_v22 = vpop.eup %2888 }
 0xdbb   :  { %2579 = vmatmul.mubr.msk.f32.vlgmr.msra.gmra.mrb[18].mxu0 %vm1798_vm9, %v2042_v13  ;;  %v2157_v31 = vmul.f32 %v2889_v22, %v3288_v29 }
 0xdbd   :  { %2160 = vrot.lane.b32.xlu1 %v3284_v28, %s2925_s12  ;;  %2735 = vmatpush3.bf16.msra.mxu1 %v2732_v4 }
 0xdbe   :  { %2162 = vrot.lane.b32.xlu0 %v3288_v29, %s2925_s12  ;;  %s2278_s12 = sshll.u32 %s2935_s10, 4  ;;  %s2279_s12 = int_to_ptr.vmem [resolvable:$true] %s2278_s12 }
 0xdbf   :  { %s2894_s2 = scalar_lea.vmem %s2279_s12, 256  ;;  %p2899_p1 = scmp.lt.s32.totalorder %s2279_s12, %s2279_s12 }
 0xdc0   :  { %p2895_p0 = scmp.ne.s32.totalorder %s2279_s12, %s2894_s2  ;;  %p2900_p2 = scmp.lt.s32.totalorder %s2894_s2, %s2894_s2 }
 0xdc2   :  { %p2901_p3 = por %p2900_p2, %p2899_p1 }
 0xdc4   :  { %p2902_p4 = pnand %p2901_p3, %p2895_p0 }
 0xe35   :  { %v1544_v15 = vpop.xlane.xlu0 %1543 }
 0xe36   :  { %vm1548_vm12 = vcmp.eq.f32.partialorder %v3415_v14, %v1544_v15  ;;  %v1590_v57 = vadd.f32 %v1544_v15, %v3302_v51  ;;  %v2932_v51 = vmov 3  }
 0xe37   :  { %v1550_v16 = vsel %vm1548_vm12, %v3300_v50, 4 }
 0xe38   :  { %v1552_v18 = vsel %vm1473_vm4, %v1550_v16, 2147483647  ;;  %2890 = vrcp.f32 %v1590_v57 }
 0xe39   :  { %v3489_v8 = vpop.xlane.xlu1 %1546  ;;  %v1554_v20 = vshra.s32 %v1552_v18, 16  ;;  %v2163_v25 = vpop.permute.xlu0 %2162  ;;  %v1553_v40 = vand.u32 65535, %v1552_v18 }
 0xe3a   :  { %vm1549_vm13 = vcmp.eq.f32.partialorder %v3435_v38, %v3489_v8  ;;  %v2167_v36 = vmul.f32 %v2163_v25, %v2157_v31  ;;  %v1591_v27 = vadd.f32 %v3489_v8, %v3308_v54 }
 0xe3b   :  { %v1556_v24 = vcvt.s32.f32 %v1554_v20  ;;  %v1551_v21 = vsel %vm1549_vm13, %v3300_v50, 4  ;;  %v1555_v47 = vcvt.s32.f32 %v1553_v40 }
 0xe3c   :  { %v1567_v14 = vsel %vm1473_vm4, %v1551_v21, 2147483647  ;;  %2892 = vrcp.f32 %v1591_v27 }
 0xe3d   :  { %v2161_v33 = vpop.permute.xlu1 %2160  ;;  %1557 = vmin.xlane.f32.xlu1 %v1556_v24  ;;  %v1569_v44 = vshra.s32 %v1567_v14, 16  ;;  %v1568_v43 = vand.u32 65535, %v1567_v14 }
 0xe3e   :  { %v2166_v35 = vmul.f32 %v2161_v33, %v2156_v30 }
 0xe3f   :  { %v1571_v37 = vcvt.s32.f32 %v1569_v44  ;;  %v1570_v49 = vcvt.s32.f32 %v1568_v43 }
 0xe40   :  { %2597 = vmatprep.mubr.msk.f32.mxu1 %vm1798_vm9, %v2166_v35 }
 0xe41   :  { %1572 = vmin.xlane.f32.xlu0 %v1571_v37  ;;  %2598 = vmatmul.mubr.msk.f32.vlgmr.msra.gmra.mrb[18].mxu1 %vm1798_vm9, %v2167_v36 }
 0xe42   :  { %v2891_v4 = vpop.eup %2890 }
 0xe46   :  { %v2893_v9 = vpop.eup %2892 }
 0xe7e   :  { %v3499_v38 = vpop.f32.mrb[16].mxu0 }
 0xe7f   :  { %v3501_v26 = vpop.f32.mrb[17].mxu0 }
 0xe83   :  { %v3503_v28 = vpop.f32.mrb[16].mxu1 }
 0xe84   :  { %v3505_v0 = vpop.f32.mrb[17].mxu1 }
 0xe8e   :  { %v3507_v29 = vpop.f32.mrb[18].mxu0 }
 0xe8f   :  { %v3509_v39 = vpop.f32.mrb[19].mxu0 }
 0xeca   :  { %v1558_v42 = vpop.xlane.xlu1 %1557 }
 0xecb   :  { %vm1559_vm14 = vcmp.eq.f32.partialorder %v1556_v24, %v1558_v42  ;;  %v1564_v59 = vcvt.f32.s32 %v1558_v42 }
 0xecc   :  { %v1560_v46 = vsel %vm1559_vm14, %v1555_v47, inf }
 0xecd   :  { %1561 = vmin.xlane.f32.xlu0 %v1560_v46  ;;  %v1565_v60 = vshll.u32 %v1564_v59, 16 }
 0xece   :  { %v1573_v48 = vpop.xlane.xlu0 %1572 }
 0xecf   :  { %vm1574_vm15 = vcmp.eq.f32.partialorder %v1571_v37, %v1573_v48  ;;  %v1579_v17 = vcvt.f32.s32 %v1573_v48 }
 0xed0   :  { %v1575_v52 = vsel %vm1574_vm15, %v1570_v49, inf }
 0xed1   :  { %1576 = vmin.xlane.f32.xlu1 %v1575_v52  ;;  %v1580_v13 = vshll.u32 %v1579_v17, 16 }
 0xf14   :  { %v3511_v55 = vpop.f32.mrb[18].mxu1 }
 0xf15   :  { %v2248_v23 = vpop.f32.mrb[19].mxu1 }
 0xf5a   :  { %v1562_v1 = vpop.xlane.xlu0 %1561 }
 0xf5b   :  { %v1563_v62 = vcvt.f32.s32 %v1562_v1 }
 0xf5d   :  { %v1566_v63 = vadd.s32 %v1565_v60, %v1563_v62 }
 0xf5e   :  { %v1577_v58 = vpop.xlane.xlu1 %1576 }
 0xf5f   :  { %vm1582_vm1 = vcmp.eq.s32.totalorder %v3300_v50, %v1566_v63  ;;  %v1578_v2 = vcvt.f32.s32 %v1577_v58 }
 0xf60   :  { %v1586_v3 = vsel %vm1582_vm1, %v1544_v15, 0.0  ;;  %v2934_v15 = vmov 2  }
 0xf61   :  { %v1588_v6 = vadd.f32 %v1586_v3, %v1584_v45  ;;  %v1581_v56 = vadd.s32 %v1580_v13, %v1578_v2 }
 0xf63   :  { %vm1583_vm2 = vcmp.eq.s32.totalorder %v3300_v50, %v1581_v56  ;;  %v1593_v12 = vmul.f32 %v2891_v4, %v1588_v6 }
 0xf64   :  { %v1587_v5 = vsel %vm1583_vm2, %v3489_v8, 0.0 }
 0xf65   :  { %v1589_v7 = vadd.f32 %v1587_v5, %v1585_v61  ;;  %1882 = vperm.xlu0 %2802, %v1593_v12  }
 0xf67   :  { %v1595_v10 = vmul.f32 %v2893_v9, %v1589_v7 }
 0xf69   :  { %1887 = vperm.xlu1 %2803, %v1595_v10   ;;  %2809 = vset.pattern.permute.xlu0 %v2932_v51 }
 0xf6d   :  { %2804 = vset.pattern.permute.xlu1 %v2933_v11 }
 0xf6e   :  { %2012 = vperm.xlu1 %2804, %v1595_v10  }
 0xf72   :  { %2805 = vset.pattern.permute.xlu1 %v2934_v15 }
 0xf73   :  { %2137 = vperm.xlu1 %2805, %v1595_v10  }
 0xf77   :  { %2806 = vset.pattern.permute.xlu1 %v2933_v11 }
 0xf78   :  { %2008 = vperm.xlu1 %2806, %v1593_v12  }
 0xf7c   :  { %2807 = vset.pattern.permute.xlu1 %v2934_v15 }
 0xf7d   :  { %2133 = vperm.xlu1 %2807, %v1593_v12  }
 0xf81   :  { %2808 = vset.pattern.permute.xlu1 %v2932_v51 }
 0xf82   :  { %2258 = vperm.xlu1 %2808, %v1593_v12  }
 0xf86   :  { %2262 = vperm.xlu1 %2808, %v1595_v10  }
 0xfe4   :  { %v1883_v20 = vpop.permute.xlu0 %1882 }
 0xfe5   :  { %v1890_v21 = vmul.f32 %v1883_v20, %v3501_v26 }
 0xfe8   :  { %v1888_v50 = vpop.permute.xlu1 %1887 }
 0xfe9   :  { %v1891_v41 = vmul.f32 %v3499_v38, %v1888_v50 }
 0xfed   :  { %v2013_v54 = vpop.permute.xlu1 %2012 }
 0xfee   :  { %v2016_v16 = vmul.f32 %v3503_v28, %v2013_v54 }
 0xff0   :  { %v2018_v18 = vadd.f32 %v2016_v16, %v1891_v41 }
 0xff2   :  { %v2138_v19 = vpop.permute.xlu1 %2137 }
 0xff3   :  { %v2141_v8 = vmul.f32 %v3507_v29, %v2138_v19 }
 0xff5   :  { %v2143_v22 = vadd.f32 %v2141_v8, %v2018_v18 }
 0xff7   :  { %v2009_v24 = vpop.permute.xlu1 %2008 }
 0xff8   :  { %v2015_v25 = vmul.f32 %v2009_v24, %v3505_v0 }
 0xffa   :  { %v2017_v30 = vadd.f32 %v2015_v25, %v1890_v21 }
 0xffc   :  { %v2134_v14 = vpop.permute.xlu1 %2133 }
 0xffd   :  { %v2140_v31 = vmul.f32 %v2134_v14, %v3509_v39 }
 0xfff   :  { %v2142_v33 = vadd.f32 %v2140_v31, %v2017_v30 }
0x1001   :  { %v2259_v44 = vpop.permute.xlu1 %2258 }
0x1002   :  { %v2265_v35 = vmul.f32 %v2259_v44, %v2248_v23 }
0x1004   :  { %v2267_v36 = vadd.f32 %v2265_v35, %v2142_v33 }
0x1005   :  { %v2263_v37 = vpop.permute.xlu1 %2262 }
0x1006   :  { %v2269_v38 = vadd.f32 %v2267_v36, %v3190_v34  ;;  %v2266_v28 = vmul.f32 %v3511_v55, %v2263_v37 }
0x1008   :  { %2271 = vst.msk [vmem:[#allocation2] sm:$0xff] %vm43_vm0, %v2269_v38  ;;  %v2268_v26 = vadd.f32 %v2266_v28, %v2143_v22 }
0x100a   :  { %v2270_v0 = vadd.f32 %v2268_v26, %v3187_v32 }
0x100c   :  { %2272 = vst.msk [vmem:[#allocation2 + $0x8] sm:$0xff] %vm43_vm0, %v2270_v0 }
0x100d   :  { %2905 = shalt.err (!%p2902_p4)
}
0x100e   :  { %s2906_s0 = scalar_lea.hbm %s3561_s11, 256 }
0x100f   :  { %p2907_p5 = scmp.ne.s32.totalorder %s3561_s11, %s2906_s0  ;;  %p2910_p6 = scmp.lt.u32.totalorder %s2906_s0, %s3561_s11 }
0x1011   :  { %p2912_p7 = pnand %p2910_p6, %p2907_p5 }
0x1013   :  { %2915 = shalt.err (!%p2912_p7)
}
0x1014   :  { %s2936_s1 = smov 128   ;;  %s2937_s4 = smov 8  }
0x1015   :  { %2284 = dma.vmem_to_hbm [thread:$0]  %s2279_s12, 256, %s3561_s11, [#allocation3], %s2936_s1, %s2936_s1, %s2937_s4  }
0x1016   :  { %2916 = dma.done.wait [#allocation3], 256  }
0x1017   :  { %2917 = vsyncadd [#allocation3], 4294967040 }
0x1018   :  { %2288 = vsyncpa [#allocation3], 1 }

</bundles_post_ra>
